<compile_context>
chip_gen: v7x
topology: tpu7x:2x2x1
jax: 0.10.0
libtpu: 0.0.40
codegen_flags: <defaults>
</compile_context>

<pallas_src>
import math
import functools

import jax
import jax.numpy as jnp
from jax import lax
from jax.experimental import pallas as pl
from jax.experimental.pallas import tpu as pltpu


def _round_up(v, m):
    return ((v + m - 1) // m) * m


# ---------------------------------------------------------------------------
# Fused Pallas kernel: nlayers encoder layers + decoder MLP epilogue
# ---------------------------------------------------------------------------
def _perfnet_fused_kernel(x_ref, mask_ref, wqkv_ref, wo_ref, w1_ref, w2_ref,
                          slab_ref, dec_w1_ref, dec_b1_ref, dec_w2_ref,
                          dec_b2_ref, out_ref, x_sc, *, nhead, seq_len):
    """Grid axis 0 = encoder layer index.

    Activation layout: [S*B, D] (s-major rows: row = s*B + b), kept resident
    in the VMEM scratch `x_sc` across all grid steps."""
    layer = pl.program_id(0)
    nlayers = pl.num_programs(0)

    BS, D = x_sc.shape
    B = BS // seq_len                      # transformer batch
    H = nhead
    hd = D // H
    d_hid = w1_ref.shape[2]
    scale = 1.0 / math.sqrt(hd)
    eps = 1e-5

    # Load the input activations into the resident scratch once.
    @pl.when(layer == 0)
    def _load_x():
        x_sc[...] = x_ref[...]

    # ---- per-layer parameters (weights bf16, small vectors packed f32) -----
    wqkv = wqkv_ref[0]                     # [D, 3D]      bf16
    w1 = w1_ref[0]                         # [D, d_hid]   bf16
    w2 = w2_ref[0]                         # [d_hid, D]   bf16
    slab = slab_ref[0]                     # [8, 128]     f32
    bqkv = slab[0:1, 0:3 * D]              # [1, 3D]
    bo = slab[1:2, 0:D]
    g1 = slab[2:3, 0:D]
    be1 = slab[3:4, 0:D]
    b1 = slab[4:5, 0:d_hid]
    b2 = slab[5:6, 0:D]
    g2 = slab[6:7, 0:D]
    be2 = slab[7:8, 0:D]

    neg = mask_ref[...]                    # [BS, BS] additive block-diag mask

    x = x_sc[...]                          # [BS, D] f32
    xb = x.astype(jnp.bfloat16)

    # ---- fused QKV projection over all rows ---------------------------------
    qkv = jnp.dot(xb, wqkv, preferred_element_type=jnp.float32) + bqkv  # [BS, 3D]
    qkvb = qkv.astype(jnp.bfloat16)

    # ---- multi-head self attention (block-diag masked, pure 2-D matmuls) ----
    attn = None
    for h in range(H):                                           # tiny static unroll
        qh = qkvb[:, h * hd:(h + 1) * hd]                        # [BS, hd]
        kh = qkvb[:, D + h * hd:D + (h + 1) * hd]                # [BS, hd]
        vh = qkvb[:, 2 * D + h * hd:2 * D + (h + 1) * hd]        # [BS, hd]
        s = lax.dot_general(qh, kh, (((1,), (1,)), ((), ())),
                            preferred_element_type=jnp.float32) * scale + neg
        m = jnp.max(s, axis=-1, keepdims=True)
        p = jnp.exp(s - m)
        p = p * pl.reciprocal(jnp.sum(p, axis=-1, keepdims=True), approx=True)
        oh = jnp.dot(p.astype(jnp.bfloat16), vh,
                     preferred_element_type=jnp.float32)         # [BS, hd]
        contrib = jnp.dot(oh.astype(jnp.bfloat16), wo_ref[0, h],
                          preferred_element_type=jnp.float32)    # [BS, D]
        attn = contrib if attn is None else attn + contrib
    attn = attn + bo

    # ---- residual + LayerNorm 1 (post-LN, PyTorch default) ------------------
    h1 = x + attn
    mu1 = jnp.mean(h1, axis=-1, keepdims=True)
    var1 = jnp.mean((h1 - mu1) ** 2, axis=-1, keepdims=True)
    y = (h1 - mu1) * lax.rsqrt(var1 + eps) * g1 + be1

    # ---- feed-forward (Linear -> ReLU -> Linear) -----------------------------
    f = jnp.maximum(jnp.dot(y.astype(jnp.bfloat16), w1,
                            preferred_element_type=jnp.float32) + b1, 0.0)
    f = jnp.dot(f.astype(jnp.bfloat16), w2,
                preferred_element_type=jnp.float32) + b2

    # ---- residual + LayerNorm 2 ----------------------------------------------
    h2 = y + f
    mu2 = jnp.mean(h2, axis=-1, keepdims=True)
    var2 = jnp.mean((h2 - mu2) ** 2, axis=-1, keepdims=True)
    z = (h2 - mu2) * lax.rsqrt(var2 + eps) * g2 + be2

    x_sc[...] = z                          # activation stays resident in VMEM

    # ---- decoder MLP epilogue (only seq-position-0 rows) ---------------------
    @pl.when(layer == nlayers - 1)
    def _decode():
        first = z[0:B, :]                  # s-major layout: rows [0:B] = seq 0
        hdec = jnp.dot(first.astype(jnp.bfloat16), dec_w1_ref[...],
                       preferred_element_type=jnp.float32) + dec_b1_ref[...]
        hdec = jnp.maximum(hdec, 0.0)
        out_ref[...] = jnp.dot(hdec.astype(jnp.bfloat16), dec_w2_ref[...],
                               preferred_element_type=jnp.float32) + dec_b2_ref[...]


# ---------------------------------------------------------------------------
# Wrapper around pallas_call
# ---------------------------------------------------------------------------
def perfnet_fused(x2, neg_mask, params, *, nhead, seq_len):
    BS, D = x2.shape
    B = BS // seq_len
    hd = D // nhead
    L = params["wqkv"].shape[0]
    d_hid = params["w1"].shape[2]
    d_mlp = params["dec_w1"].shape[1]
    out_pad = params["dec_w2"].shape[1]
    slab_w = params["slab"].shape[2]

    kernel = functools.partial(_perfnet_fused_kernel, nhead=nhead, seq_len=seq_len)
    return pl.pallas_call(
        kernel,
        out_shape=jax.ShapeDtypeStruct((B, out_pad), jnp.float32),
        grid=(L,),
        in_specs=[
            pl.BlockSpec((BS, D), lambda l: (0, 0)),                    # x (loaded once)
            pl.BlockSpec((BS, BS), lambda l: (0, 0)),                   # additive mask
            pl.BlockSpec((1, D, 3 * D), lambda l: (l, 0, 0)),           # wqkv (per layer)
            pl.BlockSpec((1, nhead, hd, D), lambda l: (l, 0, 0, 0)),    # wo per head
            pl.BlockSpec((1, D, d_hid), lambda l: (l, 0, 0)),           # w1
            pl.BlockSpec((1, d_hid, D), lambda l: (l, 0, 0)),           # w2
            pl.BlockSpec((1, 8, slab_w), lambda l: (l, 0, 0)),          # packed biases/LN
            pl.BlockSpec((D, d_mlp), lambda l: (0, 0)),                 # decoder w1
            pl.BlockSpec((1, d_mlp), lambda l: (0, 0)),                 # decoder b1
            pl.BlockSpec((d_mlp, out_pad), lambda l: (0, 0)),           # decoder w2 (padded)
            pl.BlockSpec((1, out_pad), lambda l: (0, 0)),               # decoder b2 (padded)
        ],
        out_specs=pl.BlockSpec((B, out_pad), lambda l: (0, 0)),
        scratch_shapes=[pltpu.VMEM((BS, D), jnp.float32)],
        compiler_params=pltpu.CompilerParams(
            dimension_semantics=("arbitrary",)),
    )(x2, neg_mask, params["wqkv"], params["wo"], params["w1"], params["w2"],
      params["slab"], params["dec_w1"], params["dec_b1"],
      params["dec_w2"], params["dec_b2"])


# ---------------------------------------------------------------------------
# Parameters & positional encoding (deterministic synthetic init)
# ---------------------------------------------------------------------------
def positional_encoding(max_len, d_model):
    position = jnp.arange(max_len, dtype=jnp.float32)[:, None]
    div_term = jnp.exp(
        jnp.arange(0, d_model, 2, dtype=jnp.float32) * (-math.log(10000.0) / d_model))
    pe = jnp.zeros((max_len, d_model), jnp.float32)
    pe = pe.at[:, 0::2].set(jnp.sin(position * div_term))
    pe = pe.at[:, 1::2].set(jnp.cos(position * div_term))
    return pe  # [max_len, d_model]


def init_params(key, ntoken, d_model, d_mlp, nhead, d_hid, nlayers, output_dim):
    initrange = 0.1
    D = d_model
    hd = D // nhead
    assert D % nhead == 0
    keys = jax.random.split(key, 3 + nlayers)

    params = {}
    params["embedding"] = jax.random.uniform(
        keys[0], (ntoken, D), jnp.float32, -initrange, initrange)
    params["pe"] = positional_encoding(5000, D)

    slab_w = max(_round_up(max(3 * D, d_hid, D), 128), 128)

    wqkv_l, wo_l, w1_l, w2_l, slab_l = [], [], [], [], []
    for l in range(nlayers):
        k = jax.random.split(keys[3 + l], 4)
        wqkv = jax.random.normal(k[0], (D, 3 * D), jnp.float32) * 0.05  # = in_proj_weight.T
        wo = jax.random.normal(k[1], (D, D), jnp.float32) * 0.05        # = out_proj.weight.T
        w1 = jax.random.normal(k[2], (D, d_hid), jnp.float32) * 0.05
        w2 = jax.random.normal(k[3], (d_hid, D), jnp.float32) * 0.05

        # Pack all per-layer vectors (biases + LN params) into one [8, slab_w] slab.
        slab = jnp.zeros((8, slab_w), jnp.float32)
        slab = slab.at[0, :3 * D].set(jnp.zeros((3 * D,), jnp.float32))  # qkv bias
        slab = slab.at[1, :D].set(jnp.zeros((D,), jnp.float32))          # out-proj bias
        slab = slab.at[2, :D].set(jnp.ones((D,), jnp.float32))           # ln1 weight
        slab = slab.at[3, :D].set(jnp.zeros((D,), jnp.float32))          # ln1 bias
        slab = slab.at[4, :d_hid].set(jnp.zeros((d_hid,), jnp.float32))  # ffn b1
        slab = slab.at[5, :D].set(jnp.zeros((D,), jnp.float32))          # ffn b2
        slab = slab.at[6, :D].set(jnp.ones((D,), jnp.float32))           # ln2 weight
        slab = slab.at[7, :D].set(jnp.zeros((D,), jnp.float32))          # ln2 bias

        wqkv_l.append(wqkv.astype(jnp.bfloat16))
        wo_l.append(wo.reshape(nhead, hd, D).astype(jnp.bfloat16))  # per-head rows of wo
        w1_l.append(w1.astype(jnp.bfloat16))
        w2_l.append(w2.astype(jnp.bfloat16))
        slab_l.append(slab)

    params["wqkv"] = jnp.stack(wqkv_l)     # [L, D, 3D]      bf16
    params["wo"] = jnp.stack(wo_l)         # [L, H, hd, D]   bf16
    params["w1"] = jnp.stack(w1_l)         # [L, D, d_hid]   bf16
    params["w2"] = jnp.stack(w2_l)         # [L, d_hid, D]   bf16
    params["slab"] = jnp.stack(slab_l)     # [L, 8, slab_w]  f32

    out_pad = max(_round_up(output_dim, 128), 128)   # lane-dense decoder output
    dec_w1 = jax.random.uniform(keys[1], (D, d_mlp), jnp.float32, -initrange, initrange)
    dec_w2 = jax.random.uniform(keys[2], (d_mlp, output_dim), jnp.float32,
                                -initrange, initrange)
    dec_w2_pad = jnp.zeros((d_mlp, out_pad), jnp.float32).at[:, :output_dim].set(dec_w2)
    params["dec_w1"] = dec_w1.astype(jnp.bfloat16)
    params["dec_b1"] = jnp.zeros((1, d_mlp), jnp.float32)
    params["dec_w2"] = dec_w2_pad.astype(jnp.bfloat16)
    params["dec_b2"] = jnp.zeros((1, out_pad), jnp.float32)
    params["output_dim"] = output_dim
    params["nhead"] = nhead
    return params


# ---------------------------------------------------------------------------
# Forward pass (reproduces PerformanceNet.forward without targets)
# ---------------------------------------------------------------------------
def performance_net_forward(src, params):
    """
    src: int32 [N0, N1] token ids (the torch docstring says [batch, seq], but
    nn.TransformerEncoder with batch_first=False treats dim 0 as the sequence).
    Returns float32 [N1, output_dim]  (== decoder(transformer_out[0, :, :])).
    """
    nhead = params["nhead"]
    d_model = params["embedding"].shape[1]
    S, B = src.shape[0], src.shape[1]

    # Embedding lookup + scale + positional encoding (glue: gather stays in JAX).
    x = params["embedding"][src] * math.sqrt(d_model)          # [S, B, D]
    x = x + params["pe"][:S][:, None, :]
    # TODO(synk): dropout layers omitted (stochastic; eval-mode identity).

    # Flatten to [S*B, D] (s-major rows), matching the kernel layout directly.
    x2 = x.reshape(S * B, d_model).astype(jnp.float32)

    # Additive block-diagonal mask: rows of the same batch element attend.
    row_b = jnp.arange(S * B, dtype=jnp.int32) % B
    neg_mask = jnp.where(row_b[:, None] == row_b[None, :], 0.0, -1e30
                         ).astype(jnp.float32)                 # [S*B, S*B]

    out_pad = perfnet_fused(x2, neg_mask, params, nhead=nhead, seq_len=S)  # [B, out_pad]
    return out_pad[:, :params["output_dim"]]                   # [B, output_dim]


# ---------------------------------------------------------------------------
if __name__ == "__main__":
    ntoken, d_model, d_mlp = 50, 32, 64
    nhead, d_hid, nlayers, output_dim = 4, 64, 2, 1

    key = jax.random.PRNGKey(0)
    pkey, skey = jax.random.split(key)
    params = init_params(pkey, ntoken, d_model, d_mlp, nhead, d_hid, nlayers, output_dim)

    # src: [seq_len=2, batch=8] token ids (dim 0 is the transformer sequence dim)
    src = jax.random.randint(skey, (2, 8), 0, ntoken, dtype=jnp.int32)

    out = performance_net_forward(src, params)
    out = jax.block_until_ready(out)

    assert out.shape == (src.shape[1], output_dim), out.shape
    assert bool(jnp.all(jnp.isfinite(out)))
    print("KERNEL_OK")
</pallas_src>

<mosaic_0001>
module attributes {stable_mosaic.version = 11 : i64} {
  func.func @_perfnet_fused_kernel(%arg0: i32, %arg1: memref<16x32xf32, #tpu.memory_space<vmem>>, %arg2: memref<16x16xf32, #tpu.memory_space<vmem>>, %arg3: memref<1x32x96xbf16, #tpu.memory_space<vmem>>, %arg4: memref<1x4x8x32xbf16, #tpu.memory_space<vmem>>, %arg5: memref<1x32x64xbf16, #tpu.memory_space<vmem>>, %arg6: memref<1x64x32xbf16, #tpu.memory_space<vmem>>, %arg7: memref<1x8x128xf32, #tpu.memory_space<vmem>>, %arg8: memref<32x64xbf16, #tpu.memory_space<vmem>>, %arg9: memref<1x64xf32, #tpu.memory_space<vmem>>, %arg10: memref<64x128xbf16, #tpu.memory_space<vmem>>, %arg11: memref<1x128xf32, #tpu.memory_space<vmem>>, %arg12: memref<8x128xf32, #tpu.memory_space<vmem>>, %arg13: memref<16x32xf32, #tpu.memory_space<vmem>>) attributes {dimension_semantics = [#tpu.dimension_semantics<arbitrary>], iteration_bounds = array<i64: 2>, scalar_prefetch = 0 : i64, scratch_operands = 1 : i64, tpu.core_type = #tpu.core_type<tc>, window_params = [{pipeline_mode = #tpu.pipeline_mode<synchronous>, transform_indices = @transform_0, window_bounds = array<i64: 16, 32>}, {pipeline_mode = #tpu.pipeline_mode<synchronous>, transform_indices = @transform_1, window_bounds = array<i64: 16, 16>}, {transform_indices = @transform_2, window_bounds = array<i64: 1, 32, 96>}, {transform_indices = @transform_3, window_bounds = array<i64: 1, 4, 8, 32>}, {transform_indices = @transform_4, window_bounds = array<i64: 1, 32, 64>}, {transform_indices = @transform_5, window_bounds = array<i64: 1, 64, 32>}, {transform_indices = @transform_6, window_bounds = array<i64: 1, 8, 128>}, {pipeline_mode = #tpu.pipeline_mode<synchronous>, transform_indices = @transform_7, window_bounds = array<i64: 32, 64>}, {pipeline_mode = #tpu.pipeline_mode<synchronous>, transform_indices = @transform_8, window_bounds = array<i64: 1, 64>}, {pipeline_mode = #tpu.pipeline_mode<synchronous>, transform_indices = @transform_9, window_bounds = array<i64: 64, 128>}, {pipeline_mode = #tpu.pipeline_mode<synchronous>, transform_indices = @transform_10, window_bounds = array<i64: 1, 128>}, {pipeline_mode = #tpu.pipeline_mode<synchronous>, transform_indices = @transform_11, window_bounds = array<i64: 8, 128>}]} {
    %c0_i32 = arith.constant 0 : i32
    %0 = arith.cmpi eq, %arg0, %c0_i32 : i32
    %1 = arith.extui %0 : i1 to i32
    %c0_i32_0 = arith.constant 0 : i32
    %2 = arith.cmpi ne, %1, %c0_i32_0 : i32
    scf.if %2 {
      %c0_69 = arith.constant 0 : index
      %c0_70 = arith.constant 0 : index
      %183 = vector.load %arg1[%c0_69, %c0_70] : memref<16x32xf32, #tpu.memory_space<vmem>>, vector<16x32xf32>
      %c0_71 = arith.constant 0 : index
      %c0_72 = arith.constant 0 : index
      %184 = vector.load %arg13[%c0_71, %c0_72] : memref<16x32xf32, #tpu.memory_space<vmem>>, vector<16x32xf32>
      tpu.vector_store %arg13[%c0_71, %c0_72], %183 {strides = array<i32>} : memref<16x32xf32, #tpu.memory_space<vmem>>, vector<16x32xf32>,
    } else {
    }
    %c0 = arith.constant 0 : index
    %c0_1 = arith.constant 0 : index
    %c0_2 = arith.constant 0 : index
    %3 = vector.load %arg3[%c0, %c0_1, %c0_2] : memref<1x32x96xbf16, #tpu.memory_space<vmem>>, vector<1x32x96xbf16>
    %4 = vector.shape_cast %3 : vector<1x32x96xbf16> to vector<32x96xbf16>
    %c0_3 = arith.constant 0 : index
    %c0_4 = arith.constant 0 : index
    %c0_5 = arith.constant 0 : index
    %5 = vector.load %arg5[%c0_3, %c0_4, %c0_5] : memref<1x32x64xbf16, #tpu.memory_space<vmem>>, vector<1x32x64xbf16>
    %6 = vector.shape_cast %5 : vector<1x32x64xbf16> to vector<32x64xbf16>
    %c0_6 = arith.constant 0 : index
    %c0_7 = arith.constant 0 : index
    %c0_8 = arith.constant 0 : index
    %7 = vector.load %arg6[%c0_6, %c0_7, %c0_8] : memref<1x64x32xbf16, #tpu.memory_space<vmem>>, vector<1x64x32xbf16>
    %8 = vector.shape_cast %7 : vector<1x64x32xbf16> to vector<64x32xbf16>
    %c0_9 = arith.constant 0 : index
    %c0_10 = arith.constant 0 : index
    %c0_11 = arith.constant 0 : index
    %9 = vector.load %arg7[%c0_9, %c0_10, %c0_11] : memref<1x8x128xf32, #tpu.memory_space<vmem>>, vector<1x8x128xf32>
    %10 = vector.shape_cast %9 : vector<1x8x128xf32> to vector<8x128xf32>
    %11 = vector.extract_strided_slice %10 {offsets = [0, 0], sizes = [1, 96], strides = [1, 1]} : vector<8x128xf32> to vector<1x96xf32>
    %12 = vector.extract_strided_slice %10 {offsets = [1, 0], sizes = [1, 32], strides = [1, 1]} : vector<8x128xf32> to vector<1x32xf32>
    %13 = vector.extract_strided_slice %10 {offsets = [2, 0], sizes = [1, 32], strides = [1, 1]} : vector<8x128xf32> to vector<1x32xf32>
    %14 = vector.extract_strided_slice %10 {offsets = [3, 0], sizes = [1, 32], strides = [1, 1]} : vector<8x128xf32> to vector<1x32xf32>
    %15 = vector.extract_strided_slice %10 {offsets = [4, 0], sizes = [1, 64], strides = [1, 1]} : vector<8x128xf32> to vector<1x64xf32>
    %16 = vector.extract_strided_slice %10 {offsets = [5, 0], sizes = [1, 32], strides = [1, 1]} : vector<8x128xf32> to vector<1x32xf32>
    %17 = vector.extract_strided_slice %10 {offsets = [6, 0], sizes = [1, 32], strides = [1, 1]} : vector<8x128xf32> to vector<1x32xf32>
    %18 = vector.extract_strided_slice %10 {offsets = [7, 0], sizes = [1, 32], strides = [1, 1]} : vector<8x128xf32> to vector<1x32xf32>
    %c0_12 = arith.constant 0 : index
    %c0_13 = arith.constant 0 : index
    %19 = vector.load %arg2[%c0_12, %c0_13] : memref<16x16xf32, #tpu.memory_space<vmem>>, vector<16x16xf32>
    %c0_14 = arith.constant 0 : index
    %c0_15 = arith.constant 0 : index
    %20 = vector.load %arg13[%c0_14, %c0_15] : memref<16x32xf32, #tpu.memory_space<vmem>>, vector<16x32xf32>
    %21 = arith.truncf %20 : vector<16x32xf32> to vector<16x32xbf16>
    %cst = arith.constant dense<0.000000e+00> : vector<16x96xf32>
    %22 = tpu.matmul %21, %4, %cst {dimension_numbers = #tpu.dot_dimension_numbers<[1], [0], [0], [1], [0, 0, 1, 1], [], []>} : vector<16x32xbf16>, vector<32x96xbf16>, vector<16x96xf32> -> vector<16x96xf32>
    %23 = vector.broadcast %11 : vector<1x96xf32> to vector<16x96xf32>
    %24 = arith.addf %22, %23 : vector<16x96xf32>
    %25 = arith.truncf %24 : vector<16x96xf32> to vector<16x96xbf16>
    %26 = vector.extract_strided_slice %25 {offsets = [0, 0], sizes = [16, 8], strides = [1, 1]} : vector<16x96xbf16> to vector<16x8xbf16>
    %27 = vector.extract_strided_slice %25 {offsets = [0, 32], sizes = [16, 8], strides = [1, 1]} : vector<16x96xbf16> to vector<16x8xbf16>
    %28 = vector.extract_strided_slice %25 {offsets = [0, 64], sizes = [16, 8], strides = [1, 1]} : vector<16x96xbf16> to vector<16x8xbf16>
    %cst_16 = arith.constant dense<0.000000e+00> : vector<16x16xf32>
    %29 = tpu.matmul %26, %27, %cst_16 {dimension_numbers = #tpu.dot_dimension_numbers<[1], [1], [0], [0], [0, 0, 1, 0], [], []>} : vector<16x8xbf16>, vector<16x8xbf16>, vector<16x16xf32> -> vector<16x16xf32>
    %cst_17 = arith.constant 0.353553385 : f32
    %30 = vector.broadcast %cst_17 : f32 to vector<16x16xf32>
    %31 = arith.mulf %29, %30 : vector<16x16xf32>
    %32 = arith.addf %31, %19 : vector<16x16xf32>
    %cst_18 = arith.constant dense<0xFF800000> : vector<16xf32>
    %33 = vector.multi_reduction <maximumf>, %32, %cst_18 [1] : vector<16x16xf32> to vector<16xf32>
    %34 = vector.shape_cast %33 : vector<16xf32> to vector<16x1xf32>
    %35 = vector.broadcast %34 : vector<16x1xf32> to vector<16x16xf32>
    %36 = arith.subf %32, %35 : vector<16x16xf32>
    %37 = math.exp %36 : vector<16x16xf32>
    %cst_19 = arith.constant dense<0.000000e+00> : vector<16xf32>
    %38 = vector.multi_reduction <add>, %37, %cst_19 [1] : vector<16x16xf32> to vector<16xf32>
    %39 = vector.shape_cast %38 : vector<16xf32> to vector<16x1xf32>
    %40 = tpu.reciprocal %39 {approx = true} : vector<16x1xf32> -> vector<16x1xf32>
    %41 = vector.broadcast %40 : vector<16x1xf32> to vector<16x16xf32>
    %42 = arith.mulf %37, %41 : vector<16x16xf32>
    %43 = arith.truncf %42 : vector<16x16xf32> to vector<16x16xbf16>
    %cst_20 = arith.constant dense<0.000000e+00> : vector<16x8xf32>
    %44 = tpu.matmul %43, %28, %cst_20 {dimension_numbers = #tpu.dot_dimension_numbers<[1], [0], [0], [1], [0, 0, 1, 1], [], []>} : vector<16x16xbf16>, vector<16x8xbf16>, vector<16x8xf32> -> vector<16x8xf32>
    %45 = arith.truncf %44 : vector<16x8xf32> to vector<16x8xbf16>
    %c0_21 = arith.constant 0 : index
    %c0_22 = arith.constant 0 : index
    %c0_23 = arith.constant 0 : index
    %c0_24 = arith.constant 0 : index
    %46 = vector.load %arg4[%c0_21, %c0_22, %c0_23, %c0_24] : memref<1x4x8x32xbf16, #tpu.memory_space<vmem>>, vector<1x1x8x32xbf16>
    %47 = vector.shape_cast %46 : vector<1x1x8x32xbf16> to vector<8x32xbf16>
    %cst_25 = arith.constant dense<0.000000e+00> : vector<16x32xf32>
    %48 = tpu.matmul %45, %47, %cst_25 {dimension_numbers = #tpu.dot_dimension_numbers<[1], [0], [0], [1], [0, 0, 1, 1], [], []>} : vector<16x8xbf16>, vector<8x32xbf16>, vector<16x32xf32> -> vector<16x32xf32>
    %49 = vector.extract_strided_slice %25 {offsets = [0, 8], sizes = [16, 8], strides = [1, 1]} : vector<16x96xbf16> to vector<16x8xbf16>
    %50 = vector.extract_strided_slice %25 {offsets = [0, 40], sizes = [16, 8], strides = [1, 1]} : vector<16x96xbf16> to vector<16x8xbf16>
    %51 = vector.extract_strided_slice %25 {offsets = [0, 72], sizes = [16, 8], strides = [1, 1]} : vector<16x96xbf16> to vector<16x8xbf16>
    %cst_26 = arith.constant dense<0.000000e+00> : vector<16x16xf32>
    %52 = tpu.matmul %49, %50, %cst_26 {dimension_numbers = #tpu.dot_dimension_numbers<[1], [1], [0], [0], [0, 0, 1, 0], [], []>} : vector<16x8xbf16>, vector<16x8xbf16>, vector<16x16xf32> -> vector<16x16xf32>
    %cst_27 = arith.constant 0.353553385 : f32
    %53 = vector.broadcast %cst_27 : f32 to vector<16x16xf32>
    %54 = arith.mulf %52, %53 : vector<16x16xf32>
    %55 = arith.addf %54, %19 : vector<16x16xf32>
    %cst_28 = arith.constant dense<0xFF800000> : vector<16xf32>
    %56 = vector.multi_reduction <maximumf>, %55, %cst_28 [1] : vector<16x16xf32> to vector<16xf32>
    %57 = vector.shape_cast %56 : vector<16xf32> to vector<16x1xf32>
    %58 = vector.broadcast %57 : vector<16x1xf32> to vector<16x16xf32>
    %59 = arith.subf %55, %58 : vector<16x16xf32>
    %60 = math.exp %59 : vector<16x16xf32>
    %cst_29 = arith.constant dense<0.000000e+00> : vector<16xf32>
    %61 = vector.multi_reduction <add>, %60, %cst_29 [1] : vector<16x16xf32> to vector<16xf32>
    %62 = vector.shape_cast %61 : vector<16xf32> to vector<16x1xf32>
    %63 = tpu.reciprocal %62 {approx = true} : vector<16x1xf32> -> vector<16x1xf32>
    %64 = vector.broadcast %63 : vector<16x1xf32> to vector<16x16xf32>
    %65 = arith.mulf %60, %64 : vector<16x16xf32>
    %66 = arith.truncf %65 : vector<16x16xf32> to vector<16x16xbf16>
    %cst_30 = arith.constant dense<0.000000e+00> : vector<16x8xf32>
    %67 = tpu.matmul %66, %51, %cst_30 {dimension_numbers = #tpu.dot_dimension_numbers<[1], [0], [0], [1], [0, 0, 1, 1], [], []>} : vector<16x16xbf16>, vector<16x8xbf16>, vector<16x8xf32> -> vector<16x8xf32>
    %68 = arith.truncf %67 : vector<16x8xf32> to vector<16x8xbf16>
    %c0_31 = arith.constant 0 : index
    %c1 = arith.constant 1 : index
    %c0_32 = arith.constant 0 : index
    %c0_33 = arith.constant 0 : index
    %69 = vector.load %arg4[%c0_31, %c1, %c0_32, %c0_33] : memref<1x4x8x32xbf16, #tpu.memory_space<vmem>>, vector<1x1x8x32xbf16>
    %70 = vector.shape_cast %69 : vector<1x1x8x32xbf16> to vector<8x32xbf16>
    %cst_34 = arith.constant dense<0.000000e+00> : vector<16x32xf32>
    %71 = tpu.matmul %68, %70, %cst_34 {dimension_numbers = #tpu.dot_dimension_numbers<[1], [0], [0], [1], [0, 0, 1, 1], [], []>} : vector<16x8xbf16>, vector<8x32xbf16>, vector<16x32xf32> -> vector<16x32xf32>
    %72 = arith.addf %48, %71 : vector<16x32xf32>
    %73 = vector.extract_strided_slice %25 {offsets = [0, 16], sizes = [16, 8], strides = [1, 1]} : vector<16x96xbf16> to vector<16x8xbf16>
    %74 = vector.extract_strided_slice %25 {offsets = [0, 48], sizes = [16, 8], strides = [1, 1]} : vector<16x96xbf16> to vector<16x8xbf16>
    %75 = vector.extract_strided_slice %25 {offsets = [0, 80], sizes = [16, 8], strides = [1, 1]} : vector<16x96xbf16> to vector<16x8xbf16>
    %cst_35 = arith.constant dense<0.000000e+00> : vector<16x16xf32>
    %76 = tpu.matmul %73, %74, %cst_35 {dimension_numbers = #tpu.dot_dimension_numbers<[1], [1], [0], [0], [0, 0, 1, 0], [], []>} : vector<16x8xbf16>, vector<16x8xbf16>, vector<16x16xf32> -> vector<16x16xf32>
    %cst_36 = arith.constant 0.353553385 : f32
    %77 = vector.broadcast %cst_36 : f32 to vector<16x16xf32>
    %78 = arith.mulf %76, %77 : vector<16x16xf32>
    %79 = arith.addf %78, %19 : vector<16x16xf32>
    %cst_37 = arith.constant dense<0xFF800000> : vector<16xf32>
    %80 = vector.multi_reduction <maximumf>, %79, %cst_37 [1] : vector<16x16xf32> to vector<16xf32>
    %81 = vector.shape_cast %80 : vector<16xf32> to vector<16x1xf32>
    %82 = vector.broadcast %81 : vector<16x1xf32> to vector<16x16xf32>
    %83 = arith.subf %79, %82 : vector<16x16xf32>
    %84 = math.exp %83 : vector<16x16xf32>
    %cst_38 = arith.constant dense<0.000000e+00> : vector<16xf32>
    %85 = vector.multi_reduction <add>, %84, %cst_38 [1] : vector<16x16xf32> to vector<16xf32>
    %86 = vector.shape_cast %85 : vector<16xf32> to vector<16x1xf32>
    %87 = tpu.reciprocal %86 {approx = true} : vector<16x1xf32> -> vector<16x1xf32>
    %88 = vector.broadcast %87 : vector<16x1xf32> to vector<16x16xf32>
    %89 = arith.mulf %84, %88 : vector<16x16xf32>
    %90 = arith.truncf %89 : vector<16x16xf32> to vector<16x16xbf16>
    %cst_39 = arith.constant dense<0.000000e+00> : vector<16x8xf32>
    %91 = tpu.matmul %90, %75, %cst_39 {dimension_numbers = #tpu.dot_dimension_numbers<[1], [0], [0], [1], [0, 0, 1, 1], [], []>} : vector<16x16xbf16>, vector<16x8xbf16>, vector<16x8xf32> -> vector<16x8xf32>
    %92 = arith.truncf %91 : vector<16x8xf32> to vector<16x8xbf16>
    %c0_40 = arith.constant 0 : index
    %c2 = arith.constant 2 : index
    %c0_41 = arith.constant 0 : index
    %c0_42 = arith.constant 0 : index
    %93 = vector.load %arg4[%c0_40, %c2, %c0_41, %c0_42] : memref<1x4x8x32xbf16, #tpu.memory_space<vmem>>, vector<1x1x8x32xbf16>
    %94 = vector.shape_cast %93 : vector<1x1x8x32xbf16> to vector<8x32xbf16>
    %cst_43 = arith.constant dense<0.000000e+00> : vector<16x32xf32>
    %95 = tpu.matmul %92, %94, %cst_43 {dimension_numbers = #tpu.dot_dimension_numbers<[1], [0], [0], [1], [0, 0, 1, 1], [], []>} : vector<16x8xbf16>, vector<8x32xbf16>, vector<16x32xf32> -> vector<16x32xf32>
    %96 = arith.addf %72, %95 : vector<16x32xf32>
    %97 = vector.extract_strided_slice %25 {offsets = [0, 24], sizes = [16, 8], strides = [1, 1]} : vector<16x96xbf16> to vector<16x8xbf16>
    %98 = vector.extract_strided_slice %25 {offsets = [0, 56], sizes = [16, 8], strides = [1, 1]} : vector<16x96xbf16> to vector<16x8xbf16>
    %99 = vector.extract_strided_slice %25 {offsets = [0, 88], sizes = [16, 8], strides = [1, 1]} : vector<16x96xbf16> to vector<16x8xbf16>
    %cst_44 = arith.constant dense<0.000000e+00> : vector<16x16xf32>
    %100 = tpu.matmul %97, %98, %cst_44 {dimension_numbers = #tpu.dot_dimension_numbers<[1], [1], [0], [0], [0, 0, 1, 0], [], []>} : vector<16x8xbf16>, vector<16x8xbf16>, vector<16x16xf32> -> vector<16x16xf32>
    %cst_45 = arith.constant 0.353553385 : f32
    %101 = vector.broadcast %cst_45 : f32 to vector<16x16xf32>
    %102 = arith.mulf %100, %101 : vector<16x16xf32>
    %103 = arith.addf %102, %19 : vector<16x16xf32>
    %cst_46 = arith.constant dense<0xFF800000> : vector<16xf32>
    %104 = vector.multi_reduction <maximumf>, %103, %cst_46 [1] : vector<16x16xf32> to vector<16xf32>
    %105 = vector.shape_cast %104 : vector<16xf32> to vector<16x1xf32>
    %106 = vector.broadcast %105 : vector<16x1xf32> to vector<16x16xf32>
    %107 = arith.subf %103, %106 : vector<16x16xf32>
    %108 = math.exp %107 : vector<16x16xf32>
    %cst_47 = arith.constant dense<0.000000e+00> : vector<16xf32>
    %109 = vector.multi_reduction <add>, %108, %cst_47 [1] : vector<16x16xf32> to vector<16xf32>
    %110 = vector.shape_cast %109 : vector<16xf32> to vector<16x1xf32>
    %111 = tpu.reciprocal %110 {approx = true} : vector<16x1xf32> -> vector<16x1xf32>
    %112 = vector.broadcast %111 : vector<16x1xf32> to vector<16x16xf32>
    %113 = arith.mulf %108, %112 : vector<16x16xf32>
    %114 = arith.truncf %113 : vector<16x16xf32> to vector<16x16xbf16>
    %cst_48 = arith.constant dense<0.000000e+00> : vector<16x8xf32>
    %115 = tpu.matmul %114, %99, %cst_48 {dimension_numbers = #tpu.dot_dimension_numbers<[1], [0], [0], [1], [0, 0, 1, 1], [], []>} : vector<16x16xbf16>, vector<16x8xbf16>, vector<16x8xf32> -> vector<16x8xf32>
    %116 = arith.truncf %115 : vector<16x8xf32> to vector<16x8xbf16>
    %c0_49 = arith.constant 0 : index
    %c3 = arith.constant 3 : index
    %c0_50 = arith.constant 0 : index
    %c0_51 = arith.constant 0 : index
    %117 = vector.load %arg4[%c0_49, %c3, %c0_50, %c0_51] : memref<1x4x8x32xbf16, #tpu.memory_space<vmem>>, vector<1x1x8x32xbf16>
    %118 = vector.shape_cast %117 : vector<1x1x8x32xbf16> to vector<8x32xbf16>
    %cst_52 = arith.constant dense<0.000000e+00> : vector<16x32xf32>
    %119 = tpu.matmul %116, %118, %cst_52 {dimension_numbers = #tpu.dot_dimension_numbers<[1], [0], [0], [1], [0, 0, 1, 1], [], []>} : vector<16x8xbf16>, vector<8x32xbf16>, vector<16x32xf32> -> vector<16x32xf32>
    %120 = arith.addf %96, %119 : vector<16x32xf32>
    %121 = vector.broadcast %12 : vector<1x32xf32> to vector<16x32xf32>
    %122 = arith.addf %120, %121 : vector<16x32xf32>
    %123 = arith.addf %20, %122 : vector<16x32xf32>
    %cst_53 = arith.constant dense<0.000000e+00> : vector<16xf32>
    %124 = vector.multi_reduction <add>, %123, %cst_53 [1] : vector<16x32xf32> to vector<16xf32>
    %125 = vector.shape_cast %124 : vector<16xf32> to vector<16x1xf32>
    %cst_54 = arith.constant 3.200000e+01 : f32
    %126 = vector.broadcast %cst_54 : f32 to vector<16x1xf32>
    %127 = arith.divf %125, %126 : vector<16x1xf32>
    %128 = vector.broadcast %127 : vector<16x1xf32> to vector<16x32xf32>
    %129 = arith.subf %123, %128 : vector<16x32xf32>
    %130 = arith.mulf %129, %129 : vector<16x32xf32>
    %cst_55 = arith.constant dense<0.000000e+00> : vector<16xf32>
    %131 = vector.multi_reduction <add>, %130, %cst_55 [1] : vector<16x32xf32> to vector<16xf32>
    %132 = vector.shape_cast %131 : vector<16xf32> to vector<16x1xf32>
    %cst_56 = arith.constant 3.200000e+01 : f32
    %133 = vector.broadcast %cst_56 : f32 to vector<16x1xf32>
    %134 = arith.divf %132, %133 : vector<16x1xf32>
    %135 = vector.broadcast %127 : vector<16x1xf32> to vector<16x32xf32>
    %136 = arith.subf %123, %135 : vector<16x32xf32>
    %cst_57 = arith.constant 9.99999974E-6 : f32
    %137 = vector.broadcast %cst_57 : f32 to vector<16x1xf32>
    %138 = arith.addf %134, %137 : vector<16x1xf32>
    %139 = math.rsqrt %138 : vector<16x1xf32>
    %140 = vector.broadcast %139 : vector<16x1xf32> to vector<16x32xf32>
    %141 = arith.mulf %136, %140 : vector<16x32xf32>
    %142 = vector.broadcast %13 : vector<1x32xf32> to vector<16x32xf32>
    %143 = arith.mulf %141, %142 : vector<16x32xf32>
    %144 = vector.broadcast %14 : vector<1x32xf32> to vector<16x32xf32>
    %145 = arith.addf %143, %144 : vector<16x32xf32>
    %146 = arith.truncf %145 : vector<16x32xf32> to vector<16x32xbf16>
    %cst_58 = arith.constant dense<0.000000e+00> : vector<16x64xf32>
    %147 = tpu.matmul %146, %6, %cst_58 {dimension_numbers = #tpu.dot_dimension_numbers<[1], [0], [0], [1], [0, 0, 1, 1], [], []>} : vector<16x32xbf16>, vector<32x64xbf16>, vector<16x64xf32> -> vector<16x64xf32>
    %148 = vector.broadcast %15 : vector<1x64xf32> to vector<16x64xf32>
    %149 = arith.addf %147, %148 : vector<16x64xf32>
    %cst_59 = arith.constant 0.000000e+00 : f32
    %150 = vector.broadcast %cst_59 : f32 to vector<16x64xf32>
    %151 = arith.maximumf %149, %150 : vector<16x64xf32>
    %152 = arith.truncf %151 : vector<16x64xf32> to vector<16x64xbf16>
    %cst_60 = arith.constant dense<0.000000e+00> : vector<16x32xf32>
    %153 = tpu.matmul %152, %8, %cst_60 {dimension_numbers = #tpu.dot_dimension_numbers<[1], [0], [0], [1], [0, 0, 1, 1], [], []>} : vector<16x64xbf16>, vector<64x32xbf16>, vector<16x32xf32> -> vector<16x32xf32>
    %154 = vector.broadcast %16 : vector<1x32xf32> to vector<16x32xf32>
    %155 = arith.addf %153, %154 : vector<16x32xf32>
    %156 = arith.addf %145, %155 : vector<16x32xf32>
    %cst_61 = arith.constant dense<0.000000e+00> : vector<16xf32>
    %157 = vector.multi_reduction <add>, %156, %cst_61 [1] : vector<16x32xf32> to vector<16xf32>
    %158 = vector.shape_cast %157 : vector<16xf32> to vector<16x1xf32>
    %cst_62 = arith.constant 3.200000e+01 : f32
    %159 = vector.broadcast %cst_62 : f32 to vector<16x1xf32>
    %160 = arith.divf %158, %159 : vector<16x1xf32>
    %161 = vector.broadcast %160 : vector<16x1xf32> to vector<16x32xf32>
    %162 = arith.subf %156, %161 : vector<16x32xf32>
    %163 = arith.mulf %162, %162 : vector<16x32xf32>
    %cst_63 = arith.constant dense<0.000000e+00> : vector<16xf32>
    %164 = vector.multi_reduction <add>, %163, %cst_63 [1] : vector<16x32xf32> to vector<16xf32>
    %165 = vector.shape_cast %164 : vector<16xf32> to vector<16x1xf32>
    %cst_64 = arith.constant 3.200000e+01 : f32
    %166 = vector.broadcast %cst_64 : f32 to vector<16x1xf32>
    %167 = arith.divf %165, %166 : vector<16x1xf32>
    %168 = vector.broadcast %160 : vector<16x1xf32> to vector<16x32xf32>
    %169 = arith.subf %156, %168 : vector<16x32xf32>
    %cst_65 = arith.constant 9.99999974E-6 : f32
    %170 = vector.broadcast %cst_65 : f32 to vector<16x1xf32>
    %171 = arith.addf %167, %170 : vector<16x1xf32>
    %172 = math.rsqrt %171 : vector<16x1xf32>
    %173 = vector.broadcast %172 : vector<16x1xf32> to vector<16x32xf32>
    %174 = arith.mulf %169, %173 : vector<16x32xf32>
    %175 = vector.broadcast %17 : vector<1x32xf32> to vector<16x32xf32>
    %176 = arith.mulf %174, %175 : vector<16x32xf32>
    %177 = vector.broadcast %18 : vector<1x32xf32> to vector<16x32xf32>
    %178 = arith.addf %176, %177 : vector<16x32xf32>
    %c0_66 = arith.constant 0 : index
    %c0_67 = arith.constant 0 : index
    %179 = vector.load %arg13[%c0_66, %c0_67] : memref<16x32xf32, #tpu.memory_space<vmem>>, vector<16x32xf32>
    tpu.vector_store %arg13[%c0_66, %c0_67], %178 {strides = array<i32>} : memref<16x32xf32, #tpu.memory_space<vmem>>, vector<16x32xf32>,
    %c1_i32 = arith.constant 1 : i32
    %180 = arith.cmpi eq, %arg0, %c1_i32 : i32
    %181 = arith.extui %180 : i1 to i32
    %c0_i32_68 = arith.constant 0 : i32
    %182 = arith.cmpi ne, %181, %c0_i32_68 : i32
    scf.if %182 {
      %183 = vector.extract_strided_slice %178 {offsets = [0, 0], sizes = [8, 32], strides = [1, 1]} : vector<16x32xf32> to vector<8x32xf32>
      %184 = arith.truncf %183 : vector<8x32xf32> to vector<8x32xbf16>
      %c0_69 = arith.constant 0 : index
      %c0_70 = arith.constant 0 : index
      %185 = vector.load %arg8[%c0_69, %c0_70] : memref<32x64xbf16, #tpu.memory_space<vmem>>, vector<32x64xbf16>
      %cst_71 = arith.constant dense<0.000000e+00> : vector<8x64xf32>
      %186 = tpu.matmul %184, %185, %cst_71 {dimension_numbers = #tpu.dot_dimension_numbers<[1], [0], [0], [1], [0, 0, 1, 1], [], []>} : vector<8x32xbf16>, vector<32x64xbf16>, vector<8x64xf32> -> vector<8x64xf32>
      %c0_72 = arith.constant 0 : index
      %c0_73 = arith.constant 0 : index
      %187 = vector.load %arg9[%c0_72, %c0_73] : memref<1x64xf32, #tpu.memory_space<vmem>>, vector<1x64xf32>
      %188 = vector.broadcast %187 : vector<1x64xf32> to vector<8x64xf32>
      %189 = arith.addf %186, %188 : vector<8x64xf32>
      %cst_74 = arith.constant 0.000000e+00 : f32
      %190 = vector.broadcast %cst_74 : f32 to vector<8x64xf32>
      %191 = arith.maximumf %189, %190 : vector<8x64xf32>
      %192 = arith.truncf %191 : vector<8x64xf32> to vector<8x64xbf16>
      %c0_75 = arith.constant 0 : index
      %c0_76 = arith.constant 0 : index
      %193 = vector.load %arg10[%c0_75, %c0_76] : memref<64x128xbf16, #tpu.memory_space<vmem>>, vector<64x128xbf16>
      %cst_77 = arith.constant dense<0.000000e+00> : vector<8x128xf32>
      %194 = tpu.matmul %192, %193, %cst_77 {dimension_numbers = #tpu.dot_dimension_numbers<[1], [0], [0], [1], [0, 0, 1, 1], [], []>} : vector<8x64xbf16>, vector<64x128xbf16>, vector<8x128xf32> -> vector<8x128xf32>
      %c0_78 = arith.constant 0 : index
      %c0_79 = arith.constant 0 : index
      %195 = vector.load %arg11[%c0_78, %c0_79] : memref<1x128xf32, #tpu.memory_space<vmem>>, vector<1x128xf32>
      %196 = vector.broadcast %195 : vector<1x128xf32> to vector<8x128xf32>
      %197 = arith.addf %194, %196 : vector<8x128xf32>
      %c0_80 = arith.constant 0 : index
      %c0_81 = arith.constant 0 : index
      %198 = vector.load %arg12[%c0_80, %c0_81] : memref<8x128xf32, #tpu.memory_space<vmem>>, vector<8x128xf32>
      tpu.vector_store %arg12[%c0_80, %c0_81], %197 {strides = array<i32>} : memref<8x128xf32, #tpu.memory_space<vmem>>, vector<8x128xf32>,
    } else {
    }
    return
  }
  func.func @transform_0(%arg0: i32) -> (i32, i32) {
    %c0_i32 = arith.constant 0 : i32
    %c0_i32_0 = arith.constant 0 : i32
    %c0_i32_1 = arith.constant 0 : i32
    return %c0_i32, %c0_i32_0 : i32, i32
  }
  func.func @transform_1(%arg0: i32) -> (i32, i32) {
    %c0_i32 = arith.constant 0 : i32
    %c0_i32_0 = arith.constant 0 : i32
    %c0_i32_1 = arith.constant 0 : i32
    return %c0_i32, %c0_i32_0 : i32, i32
  }
  func.func @transform_2(%arg0: i32) -> (i32, i32, i32) {
    %c0_i32 = arith.constant 0 : i32
    %c0_i32_0 = arith.constant 0 : i32
    %c0_i32_1 = arith.constant 0 : i32
    return %arg0, %c0_i32, %c0_i32_0 : i32, i32, i32
  }
  func.func @transform_3(%arg0: i32) -> (i32, i32, i32, i32) {
    %c0_i32 = arith.constant 0 : i32
    %c0_i32_0 = arith.constant 0 : i32
    %c0_i32_1 = arith.constant 0 : i32
    %c0_i32_2 = arith.constant 0 : i32
    return %arg0, %c0_i32, %c0_i32_0, %c0_i32_1 : i32, i32, i32, i32
  }
  func.func @transform_4(%arg0: i32) -> (i32, i32, i32) {
    %c0_i32 = arith.constant 0 : i32
    %c0_i32_0 = arith.constant 0 : i32
    %c0_i32_1 = arith.constant 0 : i32
    return %arg0, %c0_i32, %c0_i32_0 : i32, i32, i32
  }
  func.func @transform_5(%arg0: i32) -> (i32, i32, i32) {
    %c0_i32 = arith.constant 0 : i32
    %c0_i32_0 = arith.constant 0 : i32
    %c0_i32_1 = arith.constant 0 : i32
    return %arg0, %c0_i32, %c0_i32_0 : i32, i32, i32
  }
  func.func @transform_6(%arg0: i32) -> (i32, i32, i32) {
    %c0_i32 = arith.constant 0 : i32
    %c0_i32_0 = arith.constant 0 : i32
    %c0_i32_1 = arith.constant 0 : i32
    return %arg0, %c0_i32, %c0_i32_0 : i32, i32, i32
  }
  func.func @transform_7(%arg0: i32) -> (i32, i32) {
    %c0_i32 = arith.constant 0 : i32
    %c0_i32_0 = arith.constant 0 : i32
    %c0_i32_1 = arith.constant 0 : i32
    return %c0_i32, %c0_i32_0 : i32, i32
  }
  func.func @transform_8(%arg0: i32) -> (i32, i32) {
    %c0_i32 = arith.constant 0 : i32
    %c0_i32_0 = arith.constant 0 : i32
    %c0_i32_1 = arith.constant 0 : i32
    return %c0_i32, %c0_i32_0 : i32, i32
  }
  func.func @transform_9(%arg0: i32) -> (i32, i32) {
    %c0_i32 = arith.constant 0 : i32
    %c0_i32_0 = arith.constant 0 : i32
    %c0_i32_1 = arith.constant 0 : i32
    return %c0_i32, %c0_i32_0 : i32, i32
  }
  func.func @transform_10(%arg0: i32) -> (i32, i32) {
    %c0_i32 = arith.constant 0 : i32
    %c0_i32_0 = arith.constant 0 : i32
    %c0_i32_1 = arith.constant 0 : i32
    return %c0_i32, %c0_i32_0 : i32, i32
  }
  func.func @transform_11(%arg0: i32) -> (i32, i32) {
    %c0_i32 = arith.constant 0 : i32
    %c0_i32_0 = arith.constant 0 : i32
    %c0_i32_1 = arith.constant 0 : i32
    return %c0_i32, %c0_i32_0 : i32, i32
  }
}

</mosaic_0001>

<bundles_post_ra>
// kernel: tpu_custom_call.1
= control target key start
LH: loop header
LB: loop body
LE: loop exit
PB: predicated region body
PF: predicated region fallthrough
CT: control target
= control target key end

     0   :  { %s2927_s0 = inlined_call_operand.hbm [shape: f32[16,32], index: 0, kind: input, shape index: {}]   ;;  %s2928_s1 = inlined_call_operand.hbm [shape: f32[16,16], index: 1, kind: input, shape index: {}]   ;;  %s2929_s2 = inlined_call_operand.vmem [shape: bf16[2,32,96], index: 2, kind: input, shape index: {}]   ;;  %s2930_s3 = inlined_call_operand.vmem [shape: bf16[2,4,8,32], index: 3, kind: input, shape index: {}]   ;;  %s2931_s4 = inlined_call_operand.vmem [shape: bf16[2,32,64], index: 4, kind: input, shape index: {}]   ;;  %s2932_s5 = inlined_call_operand.vmem [shape: bf16[2,64,32], index: 5, kind: input, shape index: {}]   ;;  %s2933_s6 = inlined_call_operand.hbm [shape: f32[2,8,128], index: 6, kind: input, shape index: {}]   ;;  %s2934_s7 = inlined_call_operand.hbm [shape: bf16[32,64], index: 7, kind: input, shape index: {}]   ;;  %s2935_s8 = inlined_call_operand.vmem [shape: f32[1,64], index: 8, kind: input, shape index: {}]   ;;  %s2936_s9 = inlined_call_operand.vmem [shape: bf16[64,128], index: 9, kind: input, shape index: {}]   ;;  %s2937_s10 = inlined_call_operand.vmem [shape: f32[1,128], index: 10, kind: input, shape index: {}]   ;;  %s2938_s11 = inlined_call_operand.hbm [shape: f32[8,128], index: 11, kind: output, shape index: {}]  }
   0x1   :  { %2943 = sst [smem:[#allocation16_spill]] %s2935_s8 }
   0x2   :  { %2944 = sst [smem:[#allocation17_spill]] %s2937_s10 }
   0x3   :  { %2945 = sst [smem:[#allocation18_spill]] %s2938_s11 }
   0x4   :  { %16 = vsyncpa [#allocation4], 0 }
   0x5   :  { %17 = vsyncpa [#allocation7], 0 }
   0x6   :  { %18 = vsyncpa [#allocation5], 0  ;;  %s2481_s17 = smov 0   ;;  %s2483_s18 = smov 0  }
   0x7   :  { %s2485_s19 = smov 0   ;;  %s2487_s20 = smov 0  }
   0x8 LB: > { %s2500_s21 = sadd.s32 4294967295, %s2395_s20   ;;  %p190_p0 = scmp.ne.s32.totalorder %s2387_s18, %s2383_s17  ;;  %s2395_s20 = sphi %s2487_s20, %s2966_s20   ;;  %s2391_s19 = sphi %s2485_s19, %s2965_s19   ;;  %s2387_s18 = sphi %s2483_s18, %s2964_s18   ;;  %s2383_s17 = sphi %s2481_s17, %s2963_s17  }
   0x9   : > { %p2939_p1 = scmp.eq.s32.totalorder %s2500_s21, 0  ;;  %p1826_p2 = scmp.ge.s32.totalorder %s2395_s20, 1 }
   0xa   : > { %p306_p3 = scmp.lt.s32.totalorder %s2395_s20, 3  ;;  %s2397_s24 = smov [#allocation3]  }
   0xb   : > { %p2509_p5 = por %p2939_p1, %p190_p0  ;;  %s318_s25 = sshll.u32 %s2397_s24, 4  ;;  %s2517_s25 = int_to_ptr.vmem [resolvable:$true] %s318_s25 }
   0xc   : > { %p2513_p6 = pnand %p1826_p2, %p306_p3  ;;  %s2398_s27 = smov [#allocation6]  }
   0xd   : > { %s2946_s22 = scalar_select %p2509_p5, 1, 0 }
   0xe   : > { %s2947_s23 = scalar_select %p2513_p6, 1, 0 }
   0xf   : > { %p2073_p7 = pneg %p2513_p6  ;;  %s331_s28 = sshll.u32 %s2398_s27, 4  ;;  %s2527_s28 = int_to_ptr.vmem [resolvable:$true] %s331_s28 }
  0x10   : > { %s2399_s29 = smov [#allocation9]   ;;  %s2205_s14 = scalar_lea.hbm %s2927_s0, 256 }
  0x11   : > { %p2523_p8 = pnand %p2073_p7, %p2939_p1  ;;  %s2529_s30 = sshll.u32 %s2399_s29, 4  ;;  %s345_s30 = int_to_ptr.vmem [resolvable:$true] %s2529_s30 }
  0x12   : > { %p2206_p9 = scmp.ne.s32.totalorder %s2927_s0, %s2205_s14  ;;  %p2212_p13 = scmp.lt.u32.totalorder %s2205_s14, %s2927_s0 }
  0x13   : > { %p2539_p10 = pneg %p2523_p8 }
  0x15   : > { %p2208_p11 = pnand %p2539_p10, %p2206_p9 }
  0x17   : > { %p2209_p12 = pneg %p2208_p11 }
  0x19   : > { %p2214_p0 = pnand %p2212_p13, %p2209_p12 }
  0x1b   : > { %2217 = shalt.err (!%p2214_p0)
}
  0x1c   : > { %s2218_s29 = scalar_lea.vmem %s2517_s25, 256  ;;  %p2226_p4 = scmp.lt.s32.totalorder %s2517_s25, %s2517_s25 }
  0x1d   : > { %p2219_p2 = scmp.ne.s32.totalorder %s2517_s25, %s2218_s29  ;;  %p2227_p1 = scmp.lt.s32.totalorder %s2218_s29, %s2218_s29 }
  0x1f   : > { %p2221_p3 = pnand %p2219_p2, %p2539_p10  ;;  %p2228_p9 = por %p2227_p1, %p2226_p4 }
  0x21   : > { %p2222_p7 = pneg %p2221_p3 }
  0x23   : > { %p2229_p11 = pnand %p2228_p9, %p2222_p7 }
  0x25   : > { %2232 = shalt.err (!%p2229_p11)
}
  0x26   : > { %s2400_s12 = smov 128   ;;  %s2401_s13 = smov 8  }
  0x27   : > { %2076 = dma.hbm_to_vmem [thread:$0]  (!%p2523_p8), %s2927_s0, 256, %s2517_s25, [#allocation4], %s2400_s12, %s2400_s12, %s2401_s13  }
  0x28   : > { %s2233_s27 = scalar_lea.hbm %s2928_s1, 256 }
  0x29   : > { %p2234_p1 = scmp.ne.s32.totalorder %s2928_s1, %s2233_s27  ;;  %p2240_p13 = scmp.lt.u32.totalorder %s2233_s27, %s2928_s1 }
  0x2b   : > { %p2236_p4 = pnand %p2234_p1, %p2539_p10 }
  0x2d   : > { %p2237_p12 = pneg %p2236_p4 }
  0x2f   : > { %p2242_p0 = pnand %p2240_p13, %p2237_p12 }
  0x31   : > { %2245 = shalt.err (!%p2242_p0)
}
  0x32   : > { %s2246_s25 = scalar_lea.vmem %s2527_s28, 256  ;;  %p2254_p9 = scmp.lt.s32.totalorder %s2527_s28, %s2527_s28 }
  0x33   : > { %p2247_p2 = scmp.ne.s32.totalorder %s2527_s28, %s2246_s25  ;;  %p2255_p11 = scmp.lt.s32.totalorder %s2246_s25, %s2246_s25 }
  0x35   : > { %p2249_p3 = pnand %p2247_p2, %p2539_p10  ;;  %p2256_p1 = por %p2255_p11, %p2254_p9 }
  0x37   : > { %p2250_p7 = pneg %p2249_p3 }
  0x39   : > { %p2257_p4 = pnand %p2256_p1, %p2250_p7 }
  0x3b   : > { %2260 = shalt.err (!%p2257_p4)
}
  0x3c   : > { %2079 = dma.hbm_to_vmem [thread:$0]  (!%p2523_p8), %s2928_s1, 256, %s2527_s28, [#allocation7], %s2400_s12, %s2400_s12, %s2401_s13  }
  0x3d   : > { %s2261_s15 = scalar_lea.hbm %s2934_s7, 256 }
  0x3e   : > { %p2262_p12 = scmp.ne.s32.totalorder %s2934_s7, %s2261_s15  ;;  %p2268_p2 = scmp.lt.u32.totalorder %s2261_s15, %s2934_s7 }
  0x40   : > { %p2264_p13 = pnand %p2262_p12, %p2539_p10 }
  0x42   : > { %p2265_p0 = pneg %p2264_p13 }
  0x44   : > { %p2270_p3 = pnand %p2268_p2, %p2265_p0 }
  0x46   : > { %2273 = shalt.err (!%p2270_p3)
}
  0x47   : > { %s2274_s25 = scalar_lea.vmem %s345_s30, 256  ;;  %p2282_p1 = scmp.lt.s32.totalorder %s345_s30, %s345_s30 }
  0x48   : > { %p2275_p7 = scmp.ne.s32.totalorder %s345_s30, %s2274_s25  ;;  %p2283_p4 = scmp.lt.s32.totalorder %s2274_s25, %s2274_s25 }
  0x4a   : > { %p2277_p9 = pnand %p2275_p7, %p2539_p10  ;;  %p2284_p5 = por %p2283_p4, %p2282_p1 }
  0x4c   : > { %p2278_p11 = pneg %p2277_p9 }
  0x4e   : > { %p2285_p6 = pnand %p2284_p5, %p2278_p11 }
  0x50   : > { %2288 = shalt.err (!%p2285_p6)
}
  0x51   : > { %s2402_s28 = smov 64   ;;  %s2403_s17 = smov 4  }
  0x52   : > { %2082 = dma.hbm_to_vmem [thread:$0]  (!%p2523_p8), %s2934_s7, 256, %s345_s30, [#allocation7], %s2402_s28, %s2402_s28, %s2403_s17  }
  0x53   : > { %s2603_s8 = sadd.s32 1, %s2395_s20   ;;  %s177_s11 = sadd.s32 1, %s2391_s19 }
  0x54   : > { %s174_s10 = ssub.s32 %s2395_s20, %s2603_s8  ;;  %p184_p6 = scmp.ne.s32.totalorder %s2391_s19, %s2387_s18 }
  0x55   : > { %p175_p5 = scmp.eq.s32.totalorder %s174_s10, 0  ;;  %p185_p10 = scmp.eq.s32.totalorder %s2395_s20, 0 }
  0x56   : > { %p2090_p12 = scmp.lt.s32.totalorder %s2395_s20, 2  ;;  %s399_s15 = sand.u32 1, %s2395_s20  }
  0x57   : > { %s2613_s14 = scalar_select %p175_p5, %s2391_s19, %s177_s11  }
  0x58   : > { %p186_p13 = por %p185_p10, %p184_p6  ;;  %s401_s16 = sand.u32 1, %s2391_s19  }
  0x59   : > { %s1831_s24 = sshll.u32 %s401_s16, 3  ;;  %s1832_s26 = sshll.u32 %s2395_s20, 7 }
  0x5a   : > { %s2621_s30 = scalar_lea.hbm %s2933_s6, %s1832_s26  ;;  %s403_s25 = scalar_lea.vmem [#allocation8], %s1831_s24 }
  0x5b   : > { %s410_s28 = sshll.u32 %s403_s25, 4  ;;  %p2623_p8 = pnand %p2090_p12, %p186_p13  ;;  %s2627_s28 = int_to_ptr.vmem [resolvable:$true] %s410_s28 }
  0x5c   : > { %s400_s20 = scalar_lea.sflag [#allocation4], %s399_s15  ;;  %s2289_s12 = scalar_lea.hbm %s2621_s30, 128 }
  0x5d   : > { %p2290_p0 = scmp.ne.s32.totalorder %s2621_s30, %s2289_s12  ;;  %p2291_p2 = pneg %p2623_p8 }
  0x5e   : > { %s2294_s11 = scalar_lea.hbm %s2933_s6, 256  ;;  %p2295_p9 = scmp.lt.u32.totalorder %s2621_s30, %s2933_s6 }
  0x5f   : > { %p2292_p3 = pnand %p2291_p2, %p2290_p0  ;;  %p2296_p11 = scmp.lt.u32.totalorder %s2294_s11, %s2289_s12 }
  0x60   : > { %p2298_p4 = scmp.lt.u32.totalorder %s2289_s12, %s2621_s30 }
  0x61   : > { %p2293_p7 = pneg %p2292_p3  ;;  %p2297_p1 = por %p2296_p11, %p2295_p9 }
  0x63   : > { %p2299_p5 = por %p2298_p4, %p2297_p1 }
  0x65   : > { %p2300_p6 = pnand %p2299_p5, %p2293_p7 }
  0x67   : > { %2303 = shalt.err (!%p2300_p6)
}
  0x68   : > { %s2304_s15 = scalar_lea.vmem %s2627_s28, 128  ;;  %s2404_s26 = smov [#allocation8]  }
  0x69   : > { %p2305_p10 = scmp.ne.s32.totalorder %s2627_s28, %s2304_s15  ;;  %s2309_s27 = sshll.u32 %s2404_s26, 4  ;;  %s2310_s27 = int_to_ptr.vmem [resolvable:$false] %s2309_s27 }
  0x6a   : > { %s2311_s29 = scalar_lea.vmem %s2310_s27, 256  ;;  %p2312_p0 = scmp.lt.s32.totalorder %s2627_s28, %s2310_s27 }
  0x6b   : > { %p2307_p12 = pnand %p2305_p10, %p2291_p2  ;;  %p2313_p3 = scmp.lt.s32.totalorder %s2311_s29, %s2304_s15 }
  0x6d   : > { %p2308_p13 = pneg %p2307_p12  ;;  %p2314_p9 = por %p2313_p3, %p2312_p0 }
  0x6f   : > { %p2315_p11 = pnand %p2314_p9, %p2308_p13 }
  0x71   : > { %2318 = shalt.err (!%p2315_p11)
}
  0x72   : > { %2086 = dma.hbm_to_vmem [thread:$0]  (!%p2623_p8), %s2621_s30, 128, %s2627_s28, %s400_s20  }
  0x73   : > { %p2951_p7 = scmp.ne.s32.totalorder %s2947_s23, 0 }
  0x74   : > { %p2952_p2 = scmp.eq.s32.totalorder (!%p2951_p7), %s2500_s21, 0 }
  0x75   : > { %419 = sbr.rel (%p2951_p7) target bundleno = 4309 (0x10d5), region = 64 }
  0x7c   : > { %2362 = dma.done.wait (%p2952_p2), [#allocation4], 256   ;;  %p2953_p1 = pmov %p2952_p2 }
  0x7e   : > { %2364 = vsyncadd (%p2953_p1), [#allocation4], 4294967040  ;;  %p2954_p4 = pmov %p2953_p1 }
  0x7f   : > { %p2955_p5 = pmov %p2953_p1 }
  0x80   : > { %2366 = dma.done.wait (%p2954_p4), [#allocation7], 256  }
  0x81   : > { %2368 = vsyncadd (%p2955_p5), [#allocation7], 4294967040  ;;  %s429_s25 = sand.u32 1, %s2500_s21   ;;  %s431_s30 = sand.u32 1, %s2387_s18  }
  0x82   : > { %s2666_s28 = sshll.u32 %s431_s30, 3  ;;  %s430_s23 = scalar_lea.sflag [#allocation4], %s429_s25 }
  0x83   : > { %s433_s17 = scalar_lea.vmem [#allocation8], %s2666_s28  ;;  %p2956_p8 = scmp.ne.s32.totalorder %s2946_s22, 0 }
  0x85   : > { %2370 = dma.done.wait (%p2956_p8), %s430_s23, 128  }
  0x86   : > { %2372 = vsyncadd (%p2956_p8), %s430_s23, 4294967168  ;;  %p2957_p6 = pmov %p2953_p1 }
  0x87   : > { %p2958_p10 = pmov %p2953_p1 }
  0x88   : > { %2374 = dma.done.wait (%p2957_p6), [#allocation7], 256  }
  0x89   : > { %2376 = vsyncadd (%p2958_p10), [#allocation7], 4294967040  ;;  %p491_p12 = scmp.lt.s32.totalorder %s2500_s21, 1  ;;  %p2959_p13 = scmp.ne.s32.totalorder %s2500_s21, 0 }
  0x8a   : > { %v516_v0 = vld [vmem:[#allocation3] sm:$0xff] (!%p2959_p13)  ;;  %vm518_vm0 = vcmask (!%p2959_p13), 261120   ;;  %v517_v1 = vld [vmem:[#allocation3 + $0x8] sm:$0xff] (!%p2959_p13) }
  0x8b   : > { %s492_s20 = scalar_select %p491_p12, %s2500_s21, 1 }
  0x8c   : > { %515 = sbr.rel (%p2959_p13) target bundleno = 147 (0x93), region = 84  ;;  %519 = vst.msk [vmem:[#allocation2] sm:$0xff] (!%p2959_p13), %vm518_vm0, %v516_v0  ;;  %520 = vst.msk [vmem:[#allocation2 + $0x8] sm:$0xff] (!%p2959_p13), %vm518_vm0, %v517_v1 }
  0x8d   : > { %s1888_s12 = sshll.u32 %s492_s20, 4  ;;  %s1891_s13 = sshll.u32 %s492_s20, 5 }
  0x8e   : > { %s495_s16 = scalar_lea.vmem %s2929_s2, %s1888_s12  ;;  %s2685_s22 = scalar_lea.vmem %s2930_s3, %s1888_s12 }
  0x8f   : > { %s2690_s29 = scalar_lea.vmem %s2931_s4, %s1888_s12  ;;  %s2695_s23 = scalar_lea.vmem %s2932_s5, %s1891_s13 }
  0x93 PF: > { %v2151_v2 = vld [vmem:[%s495_s16] sm:$0xff]   ;;  %v2405_v3 = vmov 0.0   ;;  %v2152_v4 = vld [vmem:[%s495_s16 + $0x8] sm:$0xff]   ;;  %vm2406_vm1 = vmmov 0   ;;  %vm559_vm2 = vcmask 261120   ;;  %v543_v8 = vlaneseq  ;;  %v2721_v11 = vld [vmem:[%s433_s17] sm:$0xff] }
  0x94   : > { %1935 = vmatprep.subr.bf16.mxu1 %v2405_v3  ;;  %1949 = vmatprep.subr.bf16.mxu0 %v2405_v3  ;;  %v2703_v5 = vld [vmem:[#allocation2] sm:$0xff]  ;;  %v2705_v6 = vld [vmem:[#allocation2 + $0x8] sm:$0xff]  ;;  %s2407_s20 = smov 120   ;;  %s2408_s12 = smov 96   ;;  %vm608_vm3 = vcmask 64512   ;;  %vm660_vm4 = vcmask 130048  }
  0x95   : > { %1936 = vmatpush3.bf16.msra.mxu1 %v2151_v2  ;;  %1939 = vmatprep.mubr.msk.bf16.mxu1 %vm2406_vm1, %v2405_v3  ;;  %v542_v7 = vpack.c.bf16 %v2705_v6, %v2703_v5  ;;  %v2716_v9 = vshrl.u32 %v543_v8, 7  ;;  %s2409_s13 = smov 88   ;;  %v2740_v26 = vld [vmem:[#allocation6] sm:$0xff]  ;;  %v2742_v30 = vld [vmem:[#allocation6 + $0x8] sm:$0xff]  ;;  %s2410_s28 = smov 56   ;;  %vm864_vm5 = vcmask 1043456  }
  0x96   : > { %1937 = vmatprep.subr.bf16.mxu1 %v2405_v3  ;;  %1951 = vmatprep.mubr.msk.bf16.mxu0 %vm2406_vm1, %v2405_v3  ;;  %s2411_s17 = smov 64   ;;  %s2412_s10 = smov 80   ;;  %vm1449_vm6 = vcmask 523264  }
  0x97   : > { %v545_v10 = vsub.s32 0, %v2716_v9  ;;  %s2413_s11 = smov 112   ;;  %s2414_s16 = smov 72  }
  0x98   : > { %s2415_s24 = smov 48   ;;  %s2416_s15 = smov 104  }
  0x99   : > { %1938 = vmatpush3.bf16.msra.mxu1 %v2152_v4  ;;  %v546_v12 = vrot.slane %v2721_v11, %v545_v10  ;;  %s2417_s26 = smov 40   ;;  %p1873_p0 = scmp.ne.s32.totalorder %s2500_s21, 1 }
  0x9a   : > { %1943 = vmatprep.subr.bf16.mxu1 %v2405_v3  ;;  %vm2419_vm7 = vmmov (!%p1873_p0), 0  }
  0x9c   : > { %1940 = vmatmul.mubr.msk.bf16.vlgmr.msra.gmra.mrb[0].mxu1 %vm559_vm2, %v542_v7 }
  0x9d   : > { %1945 = vmatprep.mubr.msk.bf16.mxu1 %vm2406_vm1, %v2405_v3 }
 0x16f   : > { %v597_v13 = vpop.f32.mrb[0].mxu1 }
 0x170   : > { %v1941_v14 = vpop.f32.mrb[1].mxu1  ;;  %v598_v16 = vadd.f32 %v597_v13, %v546_v12 }
 0x171   : > { %v600_v15 = vpop.f32.mrb[2].mxu1 }
 0x172   : > { %v601_v17 = vadd.f32 %v600_v15, %v546_v12  ;;  %v1942_v18 = vpop.f32.mrb[3].mxu1 }
 0x174   : > { %v2724_v19 = vpack.c.bf16 %v601_v17, %v598_v16 }
 0x176   : > { %733 = vrot.lane.b32.xlu1 %v2724_v19, %s2407_s20  ;;  %606 = vrot.lane.b32.xlu0 %v2724_v19, %s2408_s12 }
 0x17a   : > { %735 = vrot.lane.b32.xlu0 %v2724_v19, %s2409_s13 }
 0x1e8   : > { %v607_v20 = vpop.permute.xlu0 %606  ;;  %v734_v24 = vpop.permute.xlu1 %733 }
 0x1e9   : > { %v613_v21 = vsel %vm608_vm3, %v607_v20, 0 }
 0x1ea   : > { %1944 = vmatpush3.bf16.xpose.msra.mxu1 %v613_v21 }
 0x1eb   : > { %1955 = vmatprep.subr.bf16.mxu1 %v2405_v3 }
 0x1ec   : > { %v736_v22 = vpop.permute.xlu0 %735 }
 0x1ed   : > { %v741_v23 = vsel %vm608_vm3, %v736_v22, 0 }
 0x1f1   : > { %1946 = vmatmul.mubr.msk.bf16.vlgmr.msra.gmra.mrb[4].mxu1 %vm608_vm3, %v2724_v19 }
 0x1f2   : > { %1956 = vmatpush3.bf16.xpose.msra.mxu1 %v741_v23  ;;  %1957 = vmatprep.mubr.msk.bf16.mxu1 %vm2406_vm1, %v2405_v3 }
 0x1f3   : > { %1967 = vmatprep.subr.bf16.mxu1 %v2405_v3 }
 0x1f9   : > { %1958 = vmatmul.mubr.msk.bf16.vlgmr.msra.gmra.mrb[8].mxu1 %vm608_vm3, %v734_v24 }
 0x1fa   : > { %1969 = vmatprep.mubr.msk.bf16.mxu1 %vm2406_vm1, %v2405_v3 }
 0x2c4   : > { %v649_v25 = vpop.f32.mrb[4].mxu1 }
 0x2c5   : > { %v656_v27 = vmul.f32 0.35355338, %v649_v25  ;;  %v1947_v28 = vpop.f32.mrb[5].mxu1  ;;  %v732_v25 = vld [vmem:[%s2685_s22] sm:$0xf] }
 0x2c6   : > { %v652_v29 = vpop.f32.mrb[6].mxu1  ;;  %v1854_v28 = vld [vmem:[%s2685_s22 + $0x4] sm:$0xf] }
 0x2c7   : > { %v657_v31 = vmul.f32 0.35355338, %v652_v29  ;;  %v1948_v32 = vpop.f32.mrb[7].mxu1  ;;  %v658_v33 = vadd.f32 %v656_v27, %v2740_v26  ;;  %v913_v27 = vsel %vm864_vm5, %v732_v25, 0  ;;  %v866_v29 = vsel %vm864_vm5, %v1854_v28, 0 }
 0x2c8   : > { %1968 = vmatpush3.bf16.msra.mxu1 %v866_v29  ;;  %v1859_v28 = vld [vmem:[%s2685_s22 + $0x8] sm:$0xf] }
 0x2c9   : > { %v661_v34 = vsel %vm660_vm4, %v658_v33, -inf  ;;  %v659_v35 = vadd.f32 %v657_v31, %v2742_v30  ;;  %1979 = vmatprep.subr.bf16.mxu1 %v2405_v3  ;;  %v1088_v29 = vsel %vm864_vm5, %v1859_v28, 0 }
 0x2ca   : > { %662 = vmax.xlane.f32.xlu1 %v661_v34 }
 0x2cb   : > { %v664_v36 = vsel %vm660_vm4, %v659_v35, -inf }
 0x2cc   : > { %665 = vmax.xlane.f32.xlu0 %v664_v36  ;;  %v777_v37 = vpop.f32.mrb[8].mxu1 }
 0x2cd   : > { %v784_v38 = vmul.f32 0.35355338, %v777_v37  ;;  %v1959_v39 = vpop.f32.mrb[9].mxu1 }
 0x2ce   : > { %v780_v40 = vpop.f32.mrb[10].mxu1 }
 0x2cf   : > { %v785_v41 = vmul.f32 0.35355338, %v780_v40  ;;  %v1960_v42 = vpop.f32.mrb[11].mxu1  ;;  %v786_v43 = vadd.f32 %v784_v38, %v2740_v26 }
 0x2d1   : > { %v788_v44 = vsel %vm660_vm4, %v786_v43, -inf  ;;  %v787_v45 = vadd.f32 %v785_v41, %v2742_v30 }
 0x2d2   : > { %789 = vmax.xlane.f32.xlu0 %v788_v44 }
 0x2d3   : > { %v791_v46 = vsel %vm660_vm4, %v787_v45, -inf }
 0x2d4   : > { %792 = vmax.xlane.f32.xlu1 %v791_v46 }
 0x357   : > { %v663_v47 = vpop.xlane.xlu1 %662 }
 0x358   : > { %v667_v48 = vsub.f32 %v658_v33, %v663_v47 }
 0x359   : > { %v666_v49 = vpop.xlane.xlu0 %665 }
 0x35a   : > { %v669_v50 = vmul.f32 1.442695, %v667_v48  ;;  %v668_v51 = vsub.f32 %v659_v35, %v666_v49 }
 0x35c   : > { %2159 = vpow2.f32 %v669_v50  ;;  %v671_v52 = vmul.f32 1.442695, %v668_v51 }
 0x35e   : > { %2161 = vpow2.f32 %v671_v52 }
 0x35f   : > { %v790_v53 = vpop.xlane.xlu0 %789 }
 0x360   : > { %v794_v54 = vsub.f32 %v786_v43, %v790_v53 }
 0x361   : > { %v793_v55 = vpop.xlane.xlu1 %792 }
 0x362   : > { %v796_v56 = vmul.f32 1.442695, %v794_v54  ;;  %v795_v57 = vsub.f32 %v787_v45, %v793_v55 }
 0x364   : > { %2163 = vpow2.f32 %v796_v56  ;;  %v798_v58 = vmul.f32 1.442695, %v795_v57 }
 0x366   : > { %v2160_v59 = vpop.eup %2159  ;;  %2165 = vpow2.f32 %v798_v58 }
 0x367   : > { %v673_v60 = vsel %vm660_vm4, %v2160_v59, 0.0 }
 0x368   : > { %v2162_v61 = vpop.eup %2161  ;;  %674 = vadd.xlane.f32.xlu0 %v673_v60 }
 0x369   : > { %v676_v62 = vsel %vm660_vm4, %v2162_v61, 0.0 }
 0x36a   : > { %677 = vadd.xlane.f32.xlu1 %v676_v62 }
 0x36e   : > { %v2164_v63 = vpop.eup %2163 }
 0x36f   : > { %v800_v0 = vsel %vm660_vm4, %v2164_v63, 0.0 }
 0x370   : > { %v2166_v1 = vpop.eup %2165  ;;  %801 = vadd.xlane.f32.xlu0 %v800_v0 }
 0x371   : > { %v803_v2 = vsel %vm660_vm4, %v2166_v1, 0.0 }
 0x372   : > { %804 = vadd.xlane.f32.xlu1 %v803_v2 }
 0x383   : > { %811 = vrot.lane.b32.xlu1 %v2724_v19, %s2410_s28 }
 0x386   : > { %684 = vrot.lane.b32.xlu0 %v2724_v19, %s2411_s17  ;;  %s2960_s17 = sld [smem:[#allocation16_spill]] (!%p1873_p0) }
 0x387   : > { %958 = vrot.lane.b32.xlu1 %v2724_v19, %s2412_s10 }
 0x38a   : > { %956 = vrot.lane.b32.xlu0 %v2724_v19, %s2413_s11 }
 0x3f5   : > { %v675_v4 = vpop.xlane.xlu0 %674 }
 0x3f6   : > { %2167 = vrcp.f32 %v675_v4 }
 0x3f7   : > { %v678_v7 = vpop.xlane.xlu1 %677 }
 0x3f8   : > { %2169 = vrcp.f32 %v678_v7 }
 0x3fd   : > { %v802_v8 = vpop.xlane.xlu0 %801 }
 0x3fe   : > { %2171 = vrcp.f32 %v802_v8 }
 0x3ff   : > { %v805_v10 = vpop.xlane.xlu1 %804 }
 0x400   : > { %v2168_v12 = vpop.eup %2167  ;;  %2173 = vrcp.f32 %v805_v10 }
 0x401   : > { %v685_v13 = vpop.permute.xlu0 %684  ;;  %v681_v15 = vmul.f32 %v2168_v12, %v2160_v59 }
 0x402   : > { %v2170_v14 = vpop.eup %2169  ;;  %1950 = vmatpush3.bf16.msra.mxu0 %v685_v13 }
 0x403   : > { %1961 = vmatprep.subr.bf16.mxu0 %v2405_v3  ;;  %v682_v16 = vmul.f32 %v2170_v14, %v2162_v61  ;;  %v812_v18 = vpop.permute.xlu1 %811 }
 0x405   : > { %v683_v17 = vpack.c.bf16 %v682_v16, %v681_v15  ;;  %v957_v43 = vpop.permute.xlu0 %956 }
 0x407   : > { %1952 = vmatmul.mubr.msk.bf16.vlgmr.msra.gmra.mrb[0].mxu0 %vm660_vm4, %v683_v17  ;;  %v959_v38 = vpop.permute.xlu1 %958 }
 0x408   : > { %v2172_v20 = vpop.eup %2171  ;;  %1962 = vmatpush3.bf16.msra.mxu0 %v812_v18  ;;  %1963 = vmatprep.mubr.msk.bf16.mxu0 %vm2406_vm1, %v2405_v3  ;;  %v964_v42 = vsel %vm608_vm3, %v959_v38, 0 }
 0x409   : > { %1973 = vmatprep.subr.bf16.mxu0 %v2405_v3  ;;  %v808_v22 = vmul.f32 %v2172_v20, %v2164_v63 }
 0x40a   : > { %v2174_v21 = vpop.eup %2173 }
 0x40b   : > { %v809_v23 = vmul.f32 %v2174_v21, %v2166_v1 }
 0x40d   : > { %v810_v24 = vpack.c.bf16 %v809_v23, %v808_v22 }
 0x40f   : > { %1964 = vmatmul.mubr.msk.bf16.vlgmr.msra.gmra.mrb[4].mxu0 %vm660_vm4, %v810_v24 }
 0x410   : > { %1975 = vmatprep.mubr.msk.bf16.mxu0 %vm2406_vm1, %v2405_v3  ;;  %1974 = vmatpush3.bf16.msra.mxu0 %v913_v27 }
 0x411   : > { %1985 = vmatprep.subr.bf16.mxu0 %v2405_v3 }
 0x4da   : > { %v724_v31 = vpop.f32.mrb[0].mxu0 }
 0x4db   : > { %v1953_v32 = vpop.f32.mrb[1].mxu0 }
 0x4dc   : > { %v727_v33 = vpop.f32.mrb[2].mxu0 }
 0x4dd   : > { %v731_v34 = vpack.c.bf16 %v727_v33, %v724_v31  ;;  %v1954_v35 = vpop.f32.mrb[3].mxu0 }
 0x4df   : > { %1976 = vmatmul.mubr.msk.bf16.vlgmr.msra.gmra.mrb[8].mxu0 %vm608_vm3, %v731_v34 }
 0x4e0   : > { %1987 = vmatprep.mubr.msk.bf16.mxu0 %vm2406_vm1, %v2405_v3 }
 0x4e2   : > { %v851_v36 = vpop.f32.mrb[4].mxu0 }
 0x4e3   : > { %v1965_v37 = vpop.f32.mrb[5].mxu0 }
 0x4e4   : > { %v854_v39 = vpop.f32.mrb[6].mxu0 }
 0x4e5   : > { %v858_v40 = vpack.c.bf16 %v854_v39, %v851_v36  ;;  %v1966_v41 = vpop.f32.mrb[7].mxu0 }
 0x4e7   : > { %1970 = vmatmul.mubr.msk.bf16.vlgmr.msra.gmra.mrb[12].mxu1 %vm608_vm3, %v858_v40 }
 0x4e8   : > { %1980 = vmatpush3.bf16.xpose.msra.mxu1 %v964_v42  ;;  %1981 = vmatprep.mubr.msk.bf16.mxu1 %vm2406_vm1, %v2405_v3 }
 0x4e9   : > { %1991 = vmatprep.subr.bf16.mxu1 %v2405_v3 }
 0x4ef   : > { %1982 = vmatmul.mubr.msk.bf16.vlgmr.msra.gmra.mrb[16].mxu1 %vm608_vm3, %v957_v43 }
 0x4f0   : > { %1993 = vmatprep.mubr.msk.bf16.mxu1 %vm2406_vm1, %v2405_v3  ;;  %1992 = vmatpush3.bf16.msra.mxu1 %v1088_v29 }
 0x4f1   : > { %2003 = vmatprep.subr.bf16.mxu1 %v2405_v3 }
 0x5b2   : > { %v949_v44 = vpop.f32.mrb[8].mxu0 }
 0x5b3   : > { %v1977_v45 = vpop.f32.mrb[9].mxu0 }
 0x5b4   : > { %v952_v46 = vpop.f32.mrb[10].mxu0 }
 0x5b5   : > { %v1978_v47 = vpop.f32.mrb[11].mxu0 }
 0x5ba   : > { %v902_v48 = vpop.f32.mrb[12].mxu1 }
 0x5bb   : > { %v2785_v49 = vadd.f32 %v949_v44, %v902_v48  ;;  %v1971_v50 = vpop.f32.mrb[13].mxu1 }
 0x5bc   : > { %v905_v51 = vpop.f32.mrb[14].mxu1 }
 0x5bd   : > { %v2787_v52 = vadd.f32 %v952_v46, %v905_v51  ;;  %v1972_v53 = vpop.f32.mrb[15].mxu1 }
 0x5c2   : > { %v1000_v54 = vpop.f32.mrb[16].mxu1 }
 0x5c3   : > { %v1007_v55 = vmul.f32 0.35355338, %v1000_v54  ;;  %v1983_v56 = vpop.f32.mrb[17].mxu1 }
 0x5c4   : > { %v1003_v57 = vpop.f32.mrb[18].mxu1  ;;  %v1863_v56 = vld [vmem:[%s2685_s22 + $0xc] sm:$0xf] }
 0x5c5   : > { %v1008_v58 = vmul.f32 0.35355338, %v1003_v57  ;;  %v1984_v59 = vpop.f32.mrb[19].mxu1  ;;  %v1009_v60 = vadd.f32 %v1007_v55, %v2740_v26  ;;  %v1265_v57 = vsel %vm864_vm5, %v1863_v56, 0 }
 0x5c7   : > { %v1011_v61 = vsel %vm660_vm4, %v1009_v60, -inf  ;;  %v1010_v62 = vadd.f32 %v1008_v58, %v2742_v30 }
 0x5c8   : > { %1012 = vmax.xlane.f32.xlu1 %v1011_v61 }
 0x5c9   : > { %v1014_v63 = vsel %vm660_vm4, %v1010_v62, -inf }
 0x5ca   : > { %1015 = vmax.xlane.f32.xlu0 %v1014_v63 }
 0x655   : > { %v1013_v0 = vpop.xlane.xlu1 %1012 }
 0x656   : > { %v1017_v1 = vsub.f32 %v1009_v60, %v1013_v0 }
 0x657   : > { %v1016_v2 = vpop.xlane.xlu0 %1015 }
 0x658   : > { %v1019_v4 = vmul.f32 1.442695, %v1017_v1  ;;  %v1018_v7 = vsub.f32 %v1010_v62, %v1016_v2 }
 0x65a   : > { %2175 = vpow2.f32 %v1019_v4  ;;  %v1021_v8 = vmul.f32 1.442695, %v1018_v7 }
 0x65c   : > { %2177 = vpow2.f32 %v1021_v8 }
 0x664   : > { %v2176_v10 = vpop.eup %2175 }
 0x665   : > { %v1023_v12 = vsel %vm660_vm4, %v2176_v10, 0.0 }
 0x666   : > { %v2178_v13 = vpop.eup %2177  ;;  %1024 = vadd.xlane.f32.xlu0 %v1023_v12 }
 0x667   : > { %v1026_v14 = vsel %vm660_vm4, %v2178_v13, 0.0 }
 0x668   : > { %1027 = vadd.xlane.f32.xlu1 %v1026_v14 }
 0x679   : > { %1135 = vrot.lane.b32.xlu1 %v2724_v19, %s2414_s16  ;;  %s2961_s16 = sld [smem:[#allocation17_spill]] (!%p1873_p0) }
 0x67c   : > { %1034 = vrot.lane.b32.xlu0 %v2724_v19, %s2415_s24 }
 0x67d   : > { %1133 = vrot.lane.b32.xlu1 %v2724_v19, %s2416_s15 }
 0x6f3   : > { %v1025_v15 = vpop.xlane.xlu0 %1024 }
 0x6f4   : > { %2179 = vrcp.f32 %v1025_v15  ;;  %v1312_v15 = vsub.s32 1, %v2716_v9 }
 0x6f5   : > { %v1028_v16 = vpop.xlane.xlu1 %1027 }
 0x6f6   : > { %2181 = vrcp.f32 %v1028_v16  ;;  %v1313_v16 = vrot.slane %v2721_v11, %v1312_v15 }
 0x6f7   : > { %v1035_v17 = vpop.permute.xlu0 %1034 }
 0x6f8   : > { %1986 = vmatpush3.bf16.msra.mxu0 %v1035_v17 }
 0x6f9   : > { %1997 = vmatprep.subr.bf16.mxu0 %v2405_v3  ;;  %v1136_v23 = vpop.permute.xlu1 %1135 }
 0x6fa   : > { %v1141_v25 = vsel %vm608_vm3, %v1136_v23, 0 }
 0x6fd   : > { %v1134_v27 = vpop.permute.xlu1 %1133 }
 0x6fe   : > { %v2180_v18 = vpop.eup %2179 }
 0x6ff   : > { %v1031_v21 = vmul.f32 %v2180_v18, %v2176_v10 }
 0x700   : > { %v2182_v20 = vpop.eup %2181 }
 0x701   : > { %v1032_v22 = vmul.f32 %v2182_v20, %v2178_v13 }
 0x703   : > { %v1033_v24 = vpack.c.bf16 %v1032_v22, %v1031_v21 }
 0x705   : > { %1988 = vmatmul.mubr.msk.bf16.vlgmr.msra.gmra.mrb[12].mxu0 %vm660_vm4, %v1033_v24 }
 0x706   : > { %1998 = vmatpush3.bf16.xpose.msra.mxu0 %v1141_v25  ;;  %1999 = vmatprep.mubr.msk.bf16.mxu0 %vm2406_vm1, %v2405_v3 }
 0x707   : > { %2009 = vmatprep.subr.bf16.mxu0 %v2405_v3 }
 0x70d   : > { %2000 = vmatmul.mubr.msk.bf16.vlgmr.msra.gmra.mrb[16].mxu0 %vm608_vm3, %v1134_v27 }
 0x70e   : > { %2011 = vmatprep.mubr.msk.bf16.mxu0 %vm2406_vm1, %v2405_v3  ;;  %2010 = vmatpush3.bf16.msra.mxu0 %v1265_v57 }
 0x70f   : > { %2023 = vmatprep.subr.bf16.mxu0 %v2405_v3 }
 0x7d8   : > { %v1074_v31 = vpop.f32.mrb[12].mxu0 }
 0x7d9   : > { %v1989_v32 = vpop.f32.mrb[13].mxu0 }
 0x7da   : > { %v1077_v33 = vpop.f32.mrb[14].mxu0 }
 0x7db   : > { %v1081_v34 = vpack.c.bf16 %v1077_v33, %v1074_v31  ;;  %v1990_v35 = vpop.f32.mrb[15].mxu0 }
 0x7dd   : > { %1994 = vmatmul.mubr.msk.bf16.vlgmr.msra.gmra.mrb[20].mxu1 %vm608_vm3, %v1081_v34 }
 0x7de   : > { %2005 = vmatprep.mubr.msk.bf16.mxu1 %vm2406_vm1, %v2405_v3 }
 0x7e0   : > { %v1177_v36 = vpop.f32.mrb[16].mxu0 }
 0x7e1   : > { %v1184_v37 = vmul.f32 0.35355338, %v1177_v36  ;;  %v2001_v38 = vpop.f32.mrb[17].mxu0 }
 0x7e2   : > { %v1180_v39 = vpop.f32.mrb[18].mxu0 }
 0x7e3   : > { %v1185_v40 = vmul.f32 0.35355338, %v1180_v39  ;;  %v2002_v41 = vpop.f32.mrb[19].mxu0  ;;  %v1186_v42 = vadd.f32 %v1184_v37, %v2740_v26 }
 0x7e4   : > { %v2154_v41 = vld [vmem:[%s2690_s29 + $0x8] sm:$0xff]  }
 0x7e5   : > { %v1188_v43 = vsel %vm660_vm4, %v1186_v42, -inf  ;;  %v1187_v44 = vadd.f32 %v1185_v40, %v2742_v30  ;;  %v2153_v40 = vld [vmem:[%s2690_s29] sm:$0xff]  }
 0x7e6   : > { %1189 = vmax.xlane.f32.xlu0 %v1188_v43  ;;  %v2156_v43 = vld [vmem:[%s2695_s23 + $0x8] sm:$0xff]  }
 0x7e7   : > { %v1191_v45 = vsel %vm660_vm4, %v1187_v44, -inf }
 0x7e8   : > { %1192 = vmax.xlane.f32.xlu1 %v1191_v45 }
 0x7f9   : > { %1211 = vrot.lane.b32.xlu1 %v2724_v19, %s2417_s26 }
 0x873   : > { %v1190_v46 = vpop.xlane.xlu0 %1189 }
 0x874   : > { %v1194_v47 = vsub.f32 %v1186_v42, %v1190_v46  ;;  %v2155_v42 = vld [vmem:[%s2695_s23] sm:$0xff]  }
 0x875   : > { %v1193_v48 = vpop.xlane.xlu1 %1192 }
 0x876   : > { %v1196_v50 = vmul.f32 1.442695, %v1194_v47  ;;  %v1195_v51 = vsub.f32 %v1187_v44, %v1193_v48 }
 0x878   : > { %2183 = vpow2.f32 %v1196_v50  ;;  %v1198_v53 = vmul.f32 1.442695, %v1195_v51  ;;  %v1347_v51 = vsub.s32 2, %v2716_v9 }
 0x879   : > { %v1212_v26 = vpop.permute.xlu1 %1211 }
 0x87a   : > { %2185 = vpow2.f32 %v1198_v53  ;;  %2004 = vmatpush3.bf16.msra.mxu1 %v1212_v26  ;;  %v1348_v26 = vrot.slane %v2721_v11, %v1347_v51 }
 0x87b   : > { %2015 = vmatprep.subr.bf16.mxu1 %v2405_v3 }
 0x882   : > { %v2184_v30 = vpop.eup %2183 }
 0x883   : > { %v1200_v54 = vsel %vm660_vm4, %v2184_v30, 0.0 }
 0x884   : > { %v2186_v55 = vpop.eup %2185  ;;  %1201 = vadd.xlane.f32.xlu0 %v1200_v54  ;;  %v1353_v54 = vsub.s32 3, %v2716_v9 }
 0x885   : > { %v1203_v19 = vsel %vm660_vm4, %v2186_v55, 0.0 }
 0x886   : > { %v1354_v57 = vrot.slane %v2721_v11, %v1353_v54  ;;  %v2418_v54 = vmov (!%p1873_p0), 0.0  }
 0x888   : > { %1204 = vadd.xlane.f32.xlu0 %v1203_v19 }
 0x8b0   : > { %v1124_v58 = vpop.f32.mrb[20].mxu1 }
 0x8b1   : > { %v1131_v59 = vadd.f32 %v1124_v58, %v2785_v49  ;;  %v1995_v60 = vpop.f32.mrb[21].mxu1 }
 0x8b2   : > { %v1127_v61 = vpop.f32.mrb[22].mxu1 }
 0x8b3   : > { %v1132_v62 = vadd.f32 %v1127_v61, %v2787_v52  ;;  %v1996_v63 = vpop.f32.mrb[23].mxu1 }
 0x8b4   : > { %v2158_v63 = vld [vmem:[%s2695_s23 + $0x18] sm:$0xff]  }
 0x911   : > { %v1202_v0 = vpop.xlane.xlu0 %1201 }
 0x912   : > { %2187 = vrcp.f32 %v1202_v0  ;;  %v1360_v0 = vsub.s32 4, %v2716_v9 }
 0x915   : > { %v1205_v1 = vpop.xlane.xlu0 %1204 }
 0x916   : > { %2189 = vrcp.f32 %v1205_v1  ;;  %v1361_v1 = vrot.slane %v2721_v11, %v1360_v0 }
 0x91c   : > { %v2188_v2 = vpop.eup %2187 }
 0x91d   : > { %v1208_v7 = vmul.f32 %v2188_v2, %v2184_v30 }
 0x920   : > { %v2190_v4 = vpop.eup %2189 }
 0x921   : > { %v1209_v8 = vmul.f32 %v2190_v4, %v2186_v55 }
 0x923   : > { %v1210_v10 = vpack.c.bf16 %v1209_v8, %v1208_v7 }
 0x925   : > { %2006 = vmatmul.mubr.msk.bf16.vlgmr.msra.gmra.mrb[24].mxu1 %vm660_vm4, %v1210_v10 }
 0x926   : > { %2019 = vmatprep.mubr.msk.bf16.mxu1 %vm2406_vm1, %v2405_v3  ;;  %2016 = vmatpush3.bf16.msra.mxu1 %v2153_v40 }
 0x927   : > { %2017 = vmatprep.subr.bf16.mxu1 %v2405_v3 }
 0x92a   : > { %2018 = vmatpush3.bf16.msra.mxu1 %v2154_v41 }
 0x92b   : > { %2043 = vmatprep.subr.bf16.mxu1 (!%p1873_p0), %v2418_v54 }
 0x9f8   : > { %v1251_v49 = vpop.f32.mrb[24].mxu1 }
 0x9f9   : > { %v2007_v12 = vpop.f32.mrb[25].mxu1 }
 0x9fa   : > { %v1254_v13 = vpop.f32.mrb[26].mxu1 }
 0x9fb   : > { %v1258_v14 = vpack.c.bf16 %v1254_v13, %v1251_v49  ;;  %v2008_v52 = vpop.f32.mrb[27].mxu1 }
 0x9fd   : > { %2012 = vmatmul.mubr.msk.bf16.vlgmr.msra.gmra.mrb[20].mxu0 %vm608_vm3, %v1258_v14 }
 0x9fe   : > { %2031 = vmatprep.mubr.msk.bf16.mxu0 %vm2406_vm1, %v2405_v3  ;;  %2024 = vmatpush3.bf16.msra.mxu0 %v2155_v42  ;;  %v1524_v42 = vsub.s32 6, %v2716_v9 }
 0x9ff   : > { %2025 = vmatprep.subr.bf16.mxu0 %v2405_v3 }
 0xa02   : > { %2026 = vmatpush3.bf16.msra.mxu0 %v2156_v43  ;;  %v1530_v43 = vsub.s32 7, %v2716_v9 }
 0xa03   : > { %2027 = vmatprep.subr.bf16.mxu0 %v2405_v3 }
 0xad0   : > { %v1301_v17 = vpop.f32.mrb[20].mxu0 }
 0xad1   : > { %v1308_v18 = vadd.f32 %v1301_v17, %v1131_v59  ;;  %v2013_v20 = vpop.f32.mrb[21].mxu0 }
 0xad2   : > { %v1304_v21 = vpop.f32.mrb[22].mxu0 }
 0xad3   : > { %v1314_v22 = vadd.f32 %v1313_v16, %v1308_v18  ;;  %v1309_v23 = vadd.f32 %v1304_v21, %v1132_v62  ;;  %v2014_v24 = vpop.f32.mrb[23].mxu0  ;;  %v2157_v62 = vld [vmem:[%s2695_s23 + $0x10] sm:$0xff]  }
 0xad4   : > { %2028 = vmatpush3.bf16.msra.mxu0 %v2157_v62 }
 0xad5   : > { %v1315_v25 = vadd.f32 %v1313_v16, %v1309_v23  ;;  %v1316_v27 = vadd.f32 %v1314_v22, %v2703_v5  ;;  %2029 = vmatprep.subr.bf16.mxu0 %v2405_v3  ;;  %v1423_v3 = vsub.s32 5, %v2716_v9  ;;  %v2199_v9 = vld [vmem:[#allocation9] sm:$0xff] (!%p1873_p0)  }
 0xad7   : > { %v1318_v28 = vsel %vm559_vm2, %v1316_v27, 0.0  ;;  %v1317_v29 = vadd.f32 %v1315_v25, %v2705_v6  ;;  %v1424_v52 = vrot.slane %v2721_v11, %v1423_v3 }
 0xad8   : > { %1319 = vadd.xlane.f32.xlu0 %v1318_v28  ;;  %2030 = vmatpush3.bf16.msra.mxu0 %v2158_v63 }
 0xad9   : > { %v1321_v31 = vsel %vm559_vm2, %v1317_v29, 0.0  ;;  %2035 = vmatprep.subr.bf16.mxu0 (!%p1873_p0), %v2418_v54 }
 0xadc   : > { %1322 = vadd.xlane.f32.xlu0 %v1321_v31 }
 0xb65   : > { %v1320_v32 = vpop.xlane.xlu0 %1319 }
 0xb66   : > { %v1325_v33 = vmul.f32 0.03125, %v1320_v32 }
 0xb68   : > { %v1327_v34 = vsub.f32 %v1316_v27, %v1325_v33 }
 0xb69   : > { %v1323_v35 = vpop.xlane.xlu0 %1322 }
 0xb6a   : > { %v1326_v36 = vmul.f32 0.03125, %v1323_v35  ;;  %v1329_v37 = vmul.f32 %v1327_v34, %v1327_v34 }
 0xb6c   : > { %v1328_v38 = vsub.f32 %v1317_v29, %v1326_v36  ;;  %v1331_v5 = vsel %vm559_vm2, %v1329_v37, 0.0 }
 0xb6d   : > { %1332 = vadd.xlane.f32.xlu0 %v1331_v5 }
 0xb6e   : > { %v1330_v39 = vmul.f32 %v1328_v38, %v1328_v38 }
 0xb70   : > { %v1334_v6 = vsel %vm559_vm2, %v1330_v39, 0.0 }
 0xb71   : > { %1335 = vadd.xlane.f32.xlu0 %v1334_v6 }
 0xbfa   : > { %v1333_v44 = vpop.xlane.xlu0 %1332 }
 0xbfb   : > { %v1337_v45 = vmul.f32 0.03125, %v1333_v44  ;;  %v1525_v44 = vrot.slane %v2721_v11, %v1524_v42 }
 0xbfd   : > { %v1339_v46 = vadd.f32 1e-05, %v1337_v45 }
 0xbfe   : > { %v1336_v47 = vpop.xlane.xlu0 %1335 }
 0xbff   : > { %2191 = vrsqrt.f32 %v1339_v46  ;;  %v1338_v48 = vmul.f32 0.03125, %v1336_v47  ;;  %v1531_v46 = vrot.slane %v2721_v11, %v1530_v43  ;;  %v2201_v11 = vld [vmem:[%s2936_s9] sm:$0xff] (!%p1873_p0)  }
 0xc01   : > { %v1340_v50 = vadd.f32 1e-05, %v1338_v48 }
 0xc03   : > { %2193 = vrsqrt.f32 %v1340_v50 }
 0xc09   : > { %v2192_v53 = vpop.eup %2191 }
 0xc0a   : > { %v1343_v30 = vmul.f32 %v2192_v53, %v1327_v34 }
 0xc0c   : > { %v1349_v19 = vmul.f32 %v1348_v26, %v1343_v30 }
 0xc0d   : > { %v2194_v55 = vpop.eup %2193 }
 0xc0e   : > { %v1344_v56 = vmul.f32 %v2194_v55, %v1328_v38  ;;  %v1355_v59 = vadd.f32 %v1354_v57, %v1349_v19  ;;  %v2200_v55 = vld [vmem:[#allocation9 + $0x8] sm:$0xff] (!%p1873_p0)  }
 0xc0f   : > { %v2202_v19 = vld [vmem:[%s2936_s9 + $0x8] sm:$0xff] (!%p1873_p0)  }
 0xc10   : > { %v1350_v58 = vmul.f32 %v1348_v26, %v1344_v56 }
 0xc12   : > { %v1356_v60 = vadd.f32 %v1354_v57, %v1350_v58  ;;  %v2203_v57 = vld [vmem:[%s2936_s9 + $0x10] sm:$0xff] (!%p1873_p0)   ;;  %v2204_v58 = vld [vmem:[%s2936_s9 + $0x18] sm:$0xff] (!%p1873_p0)  }
 0xc14   : > { %v1357_v61 = vpack.c.bf16 %v1356_v60, %v1355_v59 }
 0xc16   : > { %2020 = vmatmul.mubr.msk.bf16.vlgmr.msra.gmra.mrb[28].mxu1 %vm559_vm2, %v1357_v61 }
 0xc17   : > { %2051 = vmatprep.mubr.msk.bf16.mxu1 (!%p1873_p0), %vm2419_vm7, %v2418_v54  ;;  %2044 = vmatpush3.bf16.msra.mxu1 (!%p1873_p0), %v2201_v11 }
 0xc18   : > { %2045 = vmatprep.subr.bf16.mxu1 (!%p1873_p0), %v2418_v54 }
 0xc1b   : > { %2046 = vmatpush3.bf16.msra.mxu1 (!%p1873_p0), %v2202_v19 }
 0xc1c   : > { %2047 = vmatprep.subr.bf16.mxu1 (!%p1873_p0), %v2418_v54 }
 0xc1f   : > { %2048 = vmatpush3.bf16.msra.mxu1 (!%p1873_p0), %v2203_v57 }
 0xc20   : > { %2049 = vmatprep.subr.bf16.mxu1 (!%p1873_p0), %v2418_v54 }
 0xc23   : > { %2050 = vmatpush3.bf16.msra.mxu1 (!%p1873_p0), %v2204_v58 }
 0xce9   : > { %v1411_v2 = vpop.f32.mrb[28].mxu1 }
 0xcea   : > { %v1412_v4 = vadd.f32 %v1411_v2, %v1361_v1  ;;  %v2021_v7 = vpop.f32.mrb[29].mxu1 }
 0xceb   : > { %v1414_v8 = vpop.f32.mrb[30].mxu1 }
 0xcec   : > { %v1415_v10 = vadd.f32 %v1414_v8, %v1361_v1  ;;  %v2022_v49 = vpop.f32.mrb[31].mxu1  ;;  %v1418_v12 = vmax.f32 %v1412_v4, 0.0  ;;  %v1878_v4 = vld [vmem:[%s2961_s16] ss:$0 sm:$0xff] (!%p1873_p0) }
 0xcee   : > { %v1419_v13 = vmax.f32 %v1415_v10, 0.0 }
 0xcf0   : > { %v1420_v14 = vpack.c.bf16 %v1419_v13, %v1418_v12 }
 0xcf2   : > { %2032 = vmatmul.mubr.msk.bf16.vlgmr.msra.gmra.mrb[24].mxu0 %vm1449_vm6, %v1420_v14 }
 0xcf3   : > { %2036 = vmatpush3.bf16.msra.mxu0 (!%p1873_p0), %v2199_v9  ;;  %2039 = vmatprep.mubr.msk.bf16.mxu0 (!%p1873_p0), %vm2419_vm7, %v2418_v54 }
 0xcf4   : > { %2037 = vmatprep.subr.bf16.mxu0 (!%p1873_p0), %v2418_v54 }
 0xcf7   : > { %2038 = vmatpush3.bf16.msra.mxu0 (!%p1873_p0), %v2200_v55 }
 0xdc5   : > { %v1487_v15 = vpop.f32.mrb[24].mxu0 }
 0xdc6   : > { %v1488_v16 = vadd.f32 %v1487_v15, %v1424_v52  ;;  %v2033_v17 = vpop.f32.mrb[25].mxu0 }
 0xdc7   : > { %v1490_v18 = vpop.f32.mrb[26].mxu0 }
 0xdc8   : > { %v1491_v20 = vadd.f32 %v1490_v18, %v1424_v52  ;;  %v2034_v21 = vpop.f32.mrb[27].mxu0  ;;  %v1494_v22 = vadd.f32 %v1488_v16, %v1355_v59  ;;  %v1874_v59 = vld [vmem:[%s2960_s17] ss:$0 sm:$0xff] (!%p1873_p0) }
 0xdca   : > { %v1496_v23 = vsel %vm559_vm2, %v1494_v22, 0.0  ;;  %v1495_v24 = vadd.f32 %v1491_v20, %v1356_v60 }
 0xdcb   : > { %1497 = vadd.xlane.f32.xlu1 %v1496_v23 }
 0xdcc   : > { %v1499_v25 = vsel %vm559_vm2, %v1495_v24, 0.0 }
 0xdcd   : > { %1500 = vadd.xlane.f32.xlu0 %v1499_v25 }
 0xe58   : > { %v1498_v27 = vpop.xlane.xlu1 %1497 }
 0xe59   : > { %v1502_v28 = vmul.f32 0.03125, %v1498_v27 }
 0xe5a   : > { %v1501_v29 = vpop.xlane.xlu0 %1500 }
 0xe5b   : > { %v1504_v31 = vsub.f32 %v1494_v22, %v1502_v28  ;;  %v1503_v32 = vmul.f32 0.03125, %v1501_v29 }
 0xe5d   : > { %v1505_v33 = vsub.f32 %v1495_v24, %v1503_v32  ;;  %v1506_v34 = vmul.f32 %v1504_v31, %v1504_v31 }
 0xe5f   : > { %v1508_v35 = vsel %vm559_vm2, %v1506_v34, 0.0  ;;  %v1507_v36 = vmul.f32 %v1505_v33, %v1505_v33 }
 0xe60   : > { %1509 = vadd.xlane.f32.xlu0 %v1508_v35 }
 0xe61   : > { %v1511_v37 = vsel %vm559_vm2, %v1507_v36, 0.0 }
 0xe64   : > { %1512 = vadd.xlane.f32.xlu0 %v1511_v37 }
 0xeed   : > { %v1510_v38 = vpop.xlane.xlu0 %1509 }
 0xeee   : > { %v1514_v5 = vmul.f32 0.03125, %v1510_v38 }
 0xef0   : > { %v1516_v39 = vadd.f32 1e-05, %v1514_v5 }
 0xef1   : > { %v1513_v6 = vpop.xlane.xlu0 %1512 }
 0xef2   : > { %2195 = vrsqrt.f32 %v1516_v39  ;;  %v1515_v40 = vmul.f32 0.03125, %v1513_v6 }
 0xef4   : > { %v1517_v41 = vadd.f32 1e-05, %v1515_v40 }
 0xef6   : > { %2197 = vrsqrt.f32 %v1517_v41 }
 0xefc   : > { %v2196_v45 = vpop.eup %2195 }
 0xefd   : > { %v1520_v47 = vmul.f32 %v2196_v45, %v1504_v31 }
 0xeff   : > { %v1526_v48 = vmul.f32 %v1525_v44, %v1520_v47 }
 0xf00   : > { %v2198_v50 = vpop.eup %2197 }
 0xf01   : > { %v1532_v51 = vadd.f32 %v1531_v46, %v1526_v48  ;;  %v1521_v53 = vmul.f32 %v2198_v50, %v1505_v33  ;;  %1539 = sbr.rel (%p1873_p0) target bundleno = 4278 (0x10b6), region = 88 }
 0xf03   : > { %1534 = vst.msk [vmem:[#allocation2] sm:$0xff] %vm559_vm2, %v1532_v51  ;;  %v1527_v26 = vmul.f32 %v1525_v44, %v1521_v53  ;;  %v1540_v56 = vpack.c.bf16 (!%p1873_p0), %v1532_v51, %v1532_v51 }
 0xf05   : > { %v1533_v30 = vadd.f32 %v1531_v46, %v1527_v26  ;;  %2040 = vmatmul.mubr.msk.bf16.vlgmr.msra.gmra.mrb[0].mxu0 (!%p1873_p0), %vm559_vm2, %v1540_v56 }
 0xf07   : > { %1535 = vst.msk [vmem:[#allocation2 + $0x8] sm:$0xff] %vm559_vm2, %v1533_v30 }
 0xfd8   : > { %v1601_v60 = vpop.f32.mrb[0].mxu0 }
 0xfd9   : > { %v1602_v61 = vadd.f32 %v1874_v59, %v1601_v60  ;;  %v2041_v62 = vpop.f32.mrb[1].mxu0 }
 0xfda   : > { %v1604_v63 = vpop.f32.mrb[2].mxu0 }
 0xfdb   : > { %v1607_v0 = vmax.f32 %v1602_v61, 0.0  ;;  %v2042_v1 = vpop.f32.mrb[3].mxu0 }
 0xfdd   : > { %v1608_v2 = vpack.c.bf16 %v1607_v0, %v1607_v0 }
 0xfdf   : > { %2052 = vmatmul.mubr.msk.bf16.vlgmr.msra.gmra.mrb[0].mxu1 %vm1449_vm6, %v1608_v2 }
0x10b2   : > { %v1685_v7 = vpop.f32.mrb[0].mxu1 }
0x10b3   : > { %v1686_v8 = vadd.f32 %v1878_v4, %v1685_v7  ;;  %v2053_v10 = vpop.f32.mrb[1].mxu1 }
0x10b4   : > { %v1688_v49 = vpop.f32.mrb[2].mxu1 }
0x10b5   : > { %1691 = vst [vmem:[#allocation10] sm:$0xff] %v1686_v8  ;;  %v2054_v12 = vpop.f32.mrb[3].mxu1 }
0x10b6 PF: > { %p2094_p3 = scmp.eq.s32.totalorder %s2500_s21, 1  ;;  %s2420_s24 = smov [#allocation10]  }
0x10b7   : > { %s1699_s15 = sshll.u32 %s2420_s24, 4  ;;  %s1700_s15 = int_to_ptr.vmem [resolvable:$true] %s1699_s15 }
0x10b8   : > { %s2319_s26 = scalar_lea.vmem %s1700_s15, 128  ;;  %p2326_p2 = scmp.lt.s32.totalorder %s1700_s15, %s1700_s15 }
0x10b9   : > { %p2320_p9 = scmp.ne.s32.totalorder %s1700_s15, %s2319_s26  ;;  %p2327_p1 = scmp.lt.s32.totalorder %s2319_s26, %s2319_s26 }
0x10bb   : > { %p2321_p11 = pnand %p2320_p9, %p2094_p3  ;;  %p2328_p4 = por %p2327_p1, %p2326_p2 }
0x10bd   : > { %p2322_p7 = pneg %p2321_p11 }
0x10bf   : > { %p2329_p5 = pnand %p2328_p4, %p2322_p7 }
0x10c1   : > { %2332 = shalt.err (!%p2329_p5)
}
0x10c2   : > { %s2962_s29 = sld [smem:[#allocation18_spill]] }
0x10c8   : > { %s2333_s25 = scalar_lea.hbm %s2962_s29, 128 }
0x10c9   : > { %p2334_p8 = scmp.ne.s32.totalorder %s2962_s29, %s2333_s25  ;;  %p2339_p12 = scmp.lt.u32.totalorder %s2333_s25, %s2962_s29 }
0x10cb   : > { %p2335_p6 = pnand %p2334_p8, %p2094_p3 }
0x10cd   : > { %p2336_p10 = pneg %p2335_p6 }
0x10cf   : > { %p2341_p13 = pnand %p2339_p12, %p2336_p10 }
0x10d1   : > { %2344 = shalt.err (!%p2341_p13)
}
0x10d2   : > { %2070 = dma.vmem_to_hbm [thread:$0]  (%p2094_p3), %s1700_s15, 128, %s2962_s29, [#allocation5]  }
0x10d3   : > { %2378 = dma.done.wait (%p2094_p3), [#allocation5], 128  }
0x10d4   : > { %2380 = vsyncadd (%p2094_p3), [#allocation5], 4294967168 }
0x10d5 PF: > { %p21_p0 = scmp.ge.s32.totalorder %s2603_s8, 4   ;;  %s2963_s17 = smov %s2387_s18 }
0x10d6   : > { %s2964_s18 = smov %s2391_s19  ;;  %s2965_s19 = smov %s2613_s14 }
0x10d7   : > { %s2966_s20 = smov %s2603_s8  ;;  %23 = sbr.rel (!%p21_p0) target bundleno = 8 (0x8), region = 135 }
0x10de   :  { %1712 = vsyncpa [#allocation4], 1 }
0x10df   :  { %1714 = vsyncpa [#allocation4 + $0x1], 1 }
0x10e0   :  { %1715 = vsyncpa [#allocation7], 1 }
0x10e1   :  { %1716 = vsyncpa [#allocation5], 1 }
0x10e2   :  { %1718 = vsyncpa [#allocation5 + $0x1], 1 }

</bundles_post_ra>
